<compile_context>
chip_gen: v7x
topology: tpu7x:2x2x1
jax: 0.10.0
libtpu: 0.0.40
codegen_flags: <defaults>
</compile_context>

<pallas_src>
import math

import jax
import jax.numpy as jnp
from jax.experimental import pallas as pl
from jax.experimental.pallas import tpu as pltpu


# ---------------------------------------------------------------------------
# Fused kernel. One (batch, q-tile, k-tile) per grid step, all heads at once.
#   q block : (1, H, tq, D)        wq/wk/wv : (D, D)   (pre-transposed; wq scaled)
#   k block : (1, H, tk, D)        wo       : (E, E)   (= wo.T, contraction on rows)
#   v block : (1, H, tk, D)        bo       : (1, E)
#   out     : (1, tq, E)  lane-dense merged-head slab
# Scratch: qp cache (H,tq,D), m (H,tq,1), l (H,tq,1), acc (H,tq,D), ctx (tq,E)
# ---------------------------------------------------------------------------
def _fused_mha_kernel(q_ref, k_ref, v_ref,
                      wq_ref, wk_ref, wv_ref, wo_ref, bo_ref,
                      o_ref,
                      qp_sc, m_sc, l_sc, acc_sc, ctx_sc):
    ki = pl.program_id(2)
    H, tq, D = acc_sc.shape
    tk = k_ref.shape[2]

    @pl.when(ki == 0)
    def _init():
        # Project the query tile once per (batch, q-tile): one shared-weight
        # matmul with M = H*tq rows (leading-dim merge reshape is tile-preserving).
        q2 = q_ref[0].reshape(H * tq, D)
        qp = jnp.dot(q2, wq_ref[...], preferred_element_type=jnp.float32)
        qp_sc[...] = qp.reshape(H, tq, D)
        m_sc[...] = jnp.full(m_sc.shape, -jnp.inf, dtype=m_sc.dtype)
        l_sc[...] = jnp.zeros(l_sc.shape, dtype=l_sc.dtype)
        acc_sc[...] = jnp.zeros(acc_sc.shape, dtype=acc_sc.dtype)

    # Shared-weight K/V projections for this key tile: one matmul each with
    # M = H*tk rows instead of H tiny per-head matmuls.
    kp = jnp.dot(k_ref[0].reshape(H * tk, D), wk_ref[...],
                 preferred_element_type=jnp.float32).reshape(H, tk, D)
    vp = jnp.dot(v_ref[0].reshape(H * tk, D), wv_ref[...],
                 preferred_element_type=jnp.float32).reshape(H, tk, D)

    # Attention scores for this tile; the 1/sqrt(embed_size) scale is already
    # folded into wq (zero in-kernel cost).  (H, tq, tk)
    s = jnp.einsum('hqd,hkd->hqk', qp_sc[...], kp,
                   preferred_element_type=jnp.float32)

    # Online softmax with deferred normalization (unnormalized p; running l).
    m_prev = m_sc[...]
    m_new = jnp.maximum(m_prev, jnp.max(s, axis=-1, keepdims=True))
    alpha = jnp.exp(m_prev - m_new)
    p = jnp.exp(s - m_new)
    l_sc[...] = alpha * l_sc[...] + jnp.sum(p, axis=-1, keepdims=True)
    acc_sc[...] = alpha * acc_sc[...] + jnp.einsum(
        'hqk,hkd->hqd', p, vp, preferred_element_type=jnp.float32)
    m_sc[...] = m_new

    @pl.when(ki == pl.num_programs(2) - 1)
    def _finalize():
        # Normalize once per row/head at the end. (approx=True would move this
        # to the EUP but adds ~2^-12 rel. error; keep exact for the 1e-4 check.)
        ctx = acc_sc[...] * pl.reciprocal(l_sc[...], approx=False)   # (H, tq, D)
        # Merge heads into a lane-dense (tq, E) slab (finalize-only VMEM stores),
        # then fc_out as ONE K=E matmul + bias, and a single lane-dense output store.
        for h in range(H):
            ctx_sc[:, h * D:(h + 1) * D] = ctx[h]
        out = jnp.dot(ctx_sc[...], wo_ref[...],
                      preferred_element_type=jnp.float32) + bo_ref[...]
        o_ref[0] = out.astype(o_ref.dtype)


# ---------------------------------------------------------------------------
# Wrapper: reproduces SelfAttention.forward(values, keys, query, mask=None).
# ---------------------------------------------------------------------------
def self_attention_forward(values, keys, query, params, embed_size, heads,
                           *, block_q=128, block_k=256):
    N, Lq, E = query.shape
    Lk = keys.shape[1]
    Lv = values.shape[1]
    H = heads
    D = embed_size // heads
    assert D * H == embed_size
    assert Lk == Lv

    wq, wk, wv, wo, bo = params  # (D,D),(D,D),(D,D),(E,E),(E,)

    tq = min(block_q, Lq)
    tk = min(block_k, Lk)
    assert Lq % tq == 0 and Lk % tk == 0, "sequence lengths must divide tile sizes"

    # One-time XLA layout prep: split heads (N, L, E) -> (N, H, L, D).
    def split(x, L):
        return x.reshape(N, L, H, D).transpose(0, 2, 1, 3)

    qh = split(query, Lq)
    kh = split(keys, Lk)
    vh = split(values, Lv)

    # nn.Linear (y = x @ W.T): pre-transpose weights so every in-kernel matmul
    # is a plain jnp.dot with no transpose. Fold the 1/sqrt(embed_size) score
    # scale into the query weight (PyTorch divides by sqrt(embed_size)).
    scale = 1.0 / math.sqrt(float(embed_size))
    wq_t = (wq * scale).T            # (D, D)
    wk_t = wk.T                      # (D, D)
    wv_t = wv.T                      # (D, D)
    wo_t = wo.T                      # (E, E); rows indexed by h*D+d (merged heads)
    bo_2d = bo.reshape(1, E)

    grid = (N, Lq // tq, Lk // tk)

    out = pl.pallas_call(
        _fused_mha_kernel,
        out_shape=jax.ShapeDtypeStruct((N, Lq, E), jnp.float32),
        grid_spec=pltpu.PrefetchScalarGridSpec(
            num_scalar_prefetch=0,
            grid=grid,
            in_specs=[
                pl.BlockSpec((1, H, tq, D), lambda n, qi, ki: (n, 0, qi, 0)),
                pl.BlockSpec((1, H, tk, D), lambda n, qi, ki: (n, 0, ki, 0)),
                pl.BlockSpec((1, H, tk, D), lambda n, qi, ki: (n, 0, ki, 0)),
                pl.BlockSpec((D, D), lambda n, qi, ki: (0, 0)),
                pl.BlockSpec((D, D), lambda n, qi, ki: (0, 0)),
                pl.BlockSpec((D, D), lambda n, qi, ki: (0, 0)),
                pl.BlockSpec((E, E), lambda n, qi, ki: (0, 0)),
                pl.BlockSpec((1, E), lambda n, qi, ki: (0, 0)),
            ],
            out_specs=pl.BlockSpec((1, tq, E), lambda n, qi, ki: (n, qi, 0)),
            scratch_shapes=[
                pltpu.VMEM((H, tq, D), jnp.float32),   # projected-Q cache
                pltpu.VMEM((H, tq, 1), jnp.float32),   # running max m
                pltpu.VMEM((H, tq, 1), jnp.float32),   # running sum l
                pltpu.VMEM((H, tq, D), jnp.float32),   # unnormalized ctx accumulator
                pltpu.VMEM((tq, E), jnp.float32),      # merged-head lane-dense ctx
            ],
        ),
        compiler_params=pltpu.CompilerParams(
            dimension_semantics=("parallel", "parallel", "arbitrary"),
            # Explicit limit (review): comfortably under v7x's 64 MiB/TC while
            # giving headroom over the 16/32 MiB scoped defaults on v5e/v6e.
            vmem_limit_bytes=48 * 1024 * 1024,
        ),
    )(qh, kh, vh, wq_t, wk_t, wv_t, wo_t, bo_2d)

    return out


# ---------------------------------------------------------------------------
# Pure JAX reference (mirrors the PyTorch forward exactly) for validation.
# ---------------------------------------------------------------------------
def self_attention_ref(values, keys, query, params, embed_size, heads):
    N, Lq, E = query.shape
    Lk, Lv = keys.shape[1], values.shape[1]
    D = embed_size // heads
    wq, wk, wv, wo, bo = params

    v = values.reshape(N, Lv, heads, D) @ wv.T
    k = keys.reshape(N, Lk, heads, D) @ wk.T
    q = query.reshape(N, Lq, heads, D) @ wq.T

    energy = jnp.einsum('nqhd,nkhd->nhqk', q, k)
    attention = jax.nn.softmax(energy / (embed_size ** 0.5), axis=3)
    out = jnp.einsum('nhql,nlhd->nqhd', attention, v).reshape(N, Lq, heads * D)
    return out @ wo.T + bo


if __name__ == "__main__":
    N, L, E, H = 2, 8, 128, 4
    D = E // H

    key = jax.random.PRNGKey(0)
    kv, kk, kq, kwq, kwk, kwv, kwo, kbo = jax.random.split(key, 8)

    values = jax.random.normal(kv, (N, L, E), dtype=jnp.float32)
    keys_in = jax.random.normal(kk, (N, L, E), dtype=jnp.float32)
    query = jax.random.normal(kq, (N, L, E), dtype=jnp.float32)

    # nn.Linear-shaped parameters: W is (out_features, in_features).
    bound_d = 1.0 / math.sqrt(D)
    bound_e = 1.0 / math.sqrt(E)
    wq = jax.random.uniform(kwq, (D, D), minval=-bound_d, maxval=bound_d)
    wk = jax.random.uniform(kwk, (D, D), minval=-bound_d, maxval=bound_d)
    wv = jax.random.uniform(kwv, (D, D), minval=-bound_d, maxval=bound_d)
    wo = jax.random.uniform(kwo, (E, E), minval=-bound_e, maxval=bound_e)
    bo = jax.random.uniform(kbo, (E,), minval=-bound_e, maxval=bound_e)
    params = (wq, wk, wv, wo, bo)

    out = self_attention_forward(values, keys_in, query, params, E, H)
    out = jax.block_until_ready(out)

    ref = self_attention_ref(values, keys_in, query, params, E, H)
    assert out.shape == (N, L, E)
    assert jnp.allclose(out, ref, atol=1e-4, rtol=1e-4), "mismatch vs reference"

    print("KERNEL_OK")
</pallas_src>

<mosaic_0001>
module attributes {stable_mosaic.version = 11 : i64} {
  func.func @_fused_mha_kernel(%arg0: i32, %arg1: i32, %arg2: i32, %arg3: memref<1x4x8x32xf32, #tpu.memory_space<vmem>>, %arg4: memref<1x4x8x32xf32, #tpu.memory_space<vmem>>, %arg5: memref<1x4x8x32xf32, #tpu.memory_space<vmem>>, %arg6: memref<32x32xf32, #tpu.memory_space<vmem>>, %arg7: memref<32x32xf32, #tpu.memory_space<vmem>>, %arg8: memref<32x32xf32, #tpu.memory_space<vmem>>, %arg9: memref<128x128xf32, #tpu.memory_space<vmem>>, %arg10: memref<1x128xf32, #tpu.memory_space<vmem>>, %arg11: memref<1x8x128xf32, #tpu.memory_space<vmem>>, %arg12: memref<4x8x32xf32, #tpu.memory_space<vmem>>, %arg13: memref<4x8x1xf32, #tpu.memory_space<vmem>>, %arg14: memref<4x8x1xf32, #tpu.memory_space<vmem>>, %arg15: memref<4x8x32xf32, #tpu.memory_space<vmem>>, %arg16: memref<8x128xf32, #tpu.memory_space<vmem>>) attributes {dimension_semantics = [#tpu.dimension_semantics<parallel>, #tpu.dimension_semantics<parallel>, #tpu.dimension_semantics<arbitrary>], iteration_bounds = array<i64: 2, 1, 1>, scalar_prefetch = 0 : i64, scratch_operands = 5 : i64, tpu.core_type = #tpu.core_type<tc>, window_params = [{transform_indices = @transform_0, window_bounds = array<i64: 1, 4, 8, 32>}, {transform_indices = @transform_1, window_bounds = array<i64: 1, 4, 8, 32>}, {transform_indices = @transform_2, window_bounds = array<i64: 1, 4, 8, 32>}, {pipeline_mode = #tpu.pipeline_mode<synchronous>, transform_indices = @transform_3, window_bounds = array<i64: 32, 32>}, {pipeline_mode = #tpu.pipeline_mode<synchronous>, transform_indices = @transform_4, window_bounds = array<i64: 32, 32>}, {pipeline_mode = #tpu.pipeline_mode<synchronous>, transform_indices = @transform_5, window_bounds = array<i64: 32, 32>}, {pipeline_mode = #tpu.pipeline_mode<synchronous>, transform_indices = @transform_6, window_bounds = array<i64: 128, 128>}, {pipeline_mode = #tpu.pipeline_mode<synchronous>, transform_indices = @transform_7, window_bounds = array<i64: 1, 128>}, {transform_indices = @transform_8, window_bounds = array<i64: 1, 8, 128>}]} {
    %c0_i32 = arith.constant 0 : i32
    %0 = arith.cmpi eq, %arg2, %c0_i32 : i32
    %1 = arith.extui %0 : i1 to i32
    %c0_i32_0 = arith.constant 0 : i32
    %2 = arith.cmpi ne, %1, %c0_i32_0 : i32
    scf.if %2 {
      %c0_40 = arith.constant 0 : index
      %c0_41 = arith.constant 0 : index
      %c0_42 = arith.constant 0 : index
      %c0_43 = arith.constant 0 : index
      %42 = vector.load %arg3[%c0_40, %c0_41, %c0_42, %c0_43] : memref<1x4x8x32xf32, #tpu.memory_space<vmem>>, vector<1x4x8x32xf32>
      %43 = vector.shape_cast %42 : vector<1x4x8x32xf32> to vector<4x8x32xf32>
      %44 = vector.shape_cast %43 : vector<4x8x32xf32> to vector<32x32xf32>
      %c0_44 = arith.constant 0 : index
      %c0_45 = arith.constant 0 : index
      %45 = vector.load %arg6[%c0_44, %c0_45] : memref<32x32xf32, #tpu.memory_space<vmem>>, vector<32x32xf32>
      %cst_46 = arith.constant dense<0.000000e+00> : vector<32x32xf32>
      %46 = tpu.matmul %44, %45, %cst_46 {dimension_numbers = #tpu.dot_dimension_numbers<[1], [0], [0], [1], [0, 0, 1, 1], [], []>} : vector<32x32xf32>, vector<32x32xf32>, vector<32x32xf32> -> vector<32x32xf32>
      %47 = vector.shape_cast %46 : vector<32x32xf32> to vector<4x8x32xf32>
      %c0_47 = arith.constant 0 : index
      %c0_48 = arith.constant 0 : index
      %c0_49 = arith.constant 0 : index
      %48 = vector.load %arg12[%c0_47, %c0_48, %c0_49] : memref<4x8x32xf32, #tpu.memory_space<vmem>>, vector<4x8x32xf32>
      tpu.vector_store %arg12[%c0_47, %c0_48, %c0_49], %47 {strides = array<i32>} : memref<4x8x32xf32, #tpu.memory_space<vmem>>, vector<4x8x32xf32>,
      %cst_50 = arith.constant 0xFF800000 : f32
      %49 = vector.broadcast %cst_50 : f32 to vector<4x8x1xf32>
      %c0_51 = arith.constant 0 : index
      %c0_52 = arith.constant 0 : index
      %c0_53 = arith.constant 0 : index
      %50 = vector.load %arg13[%c0_51, %c0_52, %c0_53] : memref<4x8x1xf32, #tpu.memory_space<vmem>>, vector<4x8x1xf32>
      tpu.vector_store %arg13[%c0_51, %c0_52, %c0_53], %49 {strides = array<i32>} : memref<4x8x1xf32, #tpu.memory_space<vmem>>, vector<4x8x1xf32>,
      %cst_54 = arith.constant 0.000000e+00 : f32
      %51 = vector.broadcast %cst_54 : f32 to vector<4x8x1xf32>
      %c0_55 = arith.constant 0 : index
      %c0_56 = arith.constant 0 : index
      %c0_57 = arith.constant 0 : index
      %52 = vector.load %arg14[%c0_55, %c0_56, %c0_57] : memref<4x8x1xf32, #tpu.memory_space<vmem>>, vector<4x8x1xf32>
      tpu.vector_store %arg14[%c0_55, %c0_56, %c0_57], %51 {strides = array<i32>} : memref<4x8x1xf32, #tpu.memory_space<vmem>>, vector<4x8x1xf32>,
      %cst_58 = arith.constant 0.000000e+00 : f32
      %53 = vector.broadcast %cst_58 : f32 to vector<4x8x32xf32>
      %c0_59 = arith.constant 0 : index
      %c0_60 = arith.constant 0 : index
      %c0_61 = arith.constant 0 : index
      %54 = vector.load %arg15[%c0_59, %c0_60, %c0_61] : memref<4x8x32xf32, #tpu.memory_space<vmem>>, vector<4x8x32xf32>
      tpu.vector_store %arg15[%c0_59, %c0_60, %c0_61], %53 {strides = array<i32>} : memref<4x8x32xf32, #tpu.memory_space<vmem>>, vector<4x8x32xf32>,
    } else {
    }
    %c0 = arith.constant 0 : index
    %c0_1 = arith.constant 0 : index
    %c0_2 = arith.constant 0 : index
    %c0_3 = arith.constant 0 : index
    %3 = vector.load %arg4[%c0, %c0_1, %c0_2, %c0_3] : memref<1x4x8x32xf32, #tpu.memory_space<vmem>>, vector<1x4x8x32xf32>
    %4 = vector.shape_cast %3 : vector<1x4x8x32xf32> to vector<4x8x32xf32>
    %5 = vector.shape_cast %4 : vector<4x8x32xf32> to vector<32x32xf32>
    %c0_4 = arith.constant 0 : index
    %c0_5 = arith.constant 0 : index
    %6 = vector.load %arg7[%c0_4, %c0_5] : memref<32x32xf32, #tpu.memory_space<vmem>>, vector<32x32xf32>
    %cst = arith.constant dense<0.000000e+00> : vector<32x32xf32>
    %7 = tpu.matmul %5, %6, %cst {dimension_numbers = #tpu.dot_dimension_numbers<[1], [0], [0], [1], [0, 0, 1, 1], [], []>} : vector<32x32xf32>, vector<32x32xf32>, vector<32x32xf32> -> vector<32x32xf32>
    %8 = vector.shape_cast %7 : vector<32x32xf32> to vector<4x8x32xf32>
    %c0_6 = arith.constant 0 : index
    %c0_7 = arith.constant 0 : index
    %c0_8 = arith.constant 0 : index
    %c0_9 = arith.constant 0 : index
    %9 = vector.load %arg5[%c0_6, %c0_7, %c0_8, %c0_9] : memref<1x4x8x32xf32, #tpu.memory_space<vmem>>, vector<1x4x8x32xf32>
    %10 = vector.shape_cast %9 : vector<1x4x8x32xf32> to vector<4x8x32xf32>
    %11 = vector.shape_cast %10 : vector<4x8x32xf32> to vector<32x32xf32>
    %c0_10 = arith.constant 0 : index
    %c0_11 = arith.constant 0 : index
    %12 = vector.load %arg8[%c0_10, %c0_11] : memref<32x32xf32, #tpu.memory_space<vmem>>, vector<32x32xf32>
    %cst_12 = arith.constant dense<0.000000e+00> : vector<32x32xf32>
    %13 = tpu.matmul %11, %12, %cst_12 {dimension_numbers = #tpu.dot_dimension_numbers<[1], [0], [0], [1], [0, 0, 1, 1], [], []>} : vector<32x32xf32>, vector<32x32xf32>, vector<32x32xf32> -> vector<32x32xf32>
    %14 = vector.shape_cast %13 : vector<32x32xf32> to vector<4x8x32xf32>
    %c0_13 = arith.constant 0 : index
    %c0_14 = arith.constant 0 : index
    %c0_15 = arith.constant 0 : index
    %15 = vector.load %arg12[%c0_13, %c0_14, %c0_15] : memref<4x8x32xf32, #tpu.memory_space<vmem>>, vector<4x8x32xf32>
    "tpu.trace_start"() <{level = 10 : i32, message = "hqd,hkd->hqk"}> : () -> ()
    %cst_16 = arith.constant dense<0.000000e+00> : vector<4x8x8xf32>
    %16 = tpu.matmul %15, %8, %cst_16 {dimension_numbers = #tpu.dot_dimension_numbers<[2], [2], [1], [1], [0, 0, 0, 1, 1, 1], [0], [0]>} : vector<4x8x32xf32>, vector<4x8x32xf32>, vector<4x8x8xf32> -> vector<4x8x8xf32>
    "tpu.trace_stop"() : () -> ()
    %c0_17 = arith.constant 0 : index
    %c0_18 = arith.constant 0 : index
    %c0_19 = arith.constant 0 : index
    %17 = vector.load %arg13[%c0_17, %c0_18, %c0_19] : memref<4x8x1xf32, #tpu.memory_space<vmem>>, vector<4x8x1xf32>
    %cst_20 = arith.constant dense<0xFF800000> : vector<4x8xf32>
    %18 = vector.multi_reduction <maximumf>, %16, %cst_20 [2] : vector<4x8x8xf32> to vector<4x8xf32>
    %19 = vector.shape_cast %18 : vector<4x8xf32> to vector<4x8x1xf32>
    %20 = arith.maximumf %17, %19 : vector<4x8x1xf32>
    %21 = arith.subf %17, %20 : vector<4x8x1xf32>
    %22 = math.exp %21 : vector<4x8x1xf32>
    %23 = vector.broadcast %20 : vector<4x8x1xf32> to vector<4x8x8xf32>
    %24 = arith.subf %16, %23 : vector<4x8x8xf32>
    %25 = math.exp %24 : vector<4x8x8xf32>
    %c0_21 = arith.constant 0 : index
    %c0_22 = arith.constant 0 : index
    %c0_23 = arith.constant 0 : index
    %26 = vector.load %arg14[%c0_21, %c0_22, %c0_23] : memref<4x8x1xf32, #tpu.memory_space<vmem>>, vector<4x8x1xf32>
    %27 = arith.mulf %22, %26 : vector<4x8x1xf32>
    %cst_24 = arith.constant dense<0.000000e+00> : vector<4x8xf32>
    %28 = vector.multi_reduction <add>, %25, %cst_24 [2] : vector<4x8x8xf32> to vector<4x8xf32>
    %29 = vector.shape_cast %28 : vector<4x8xf32> to vector<4x8x1xf32>
    %30 = arith.addf %27, %29 : vector<4x8x1xf32>
    %c0_25 = arith.constant 0 : index
    %c0_26 = arith.constant 0 : index
    %c0_27 = arith.constant 0 : index
    %31 = vector.load %arg14[%c0_25, %c0_26, %c0_27] : memref<4x8x1xf32, #tpu.memory_space<vmem>>, vector<4x8x1xf32>
    tpu.vector_store %arg14[%c0_25, %c0_26, %c0_27], %30 {strides = array<i32>} : memref<4x8x1xf32, #tpu.memory_space<vmem>>, vector<4x8x1xf32>,
    %c0_28 = arith.constant 0 : index
    %c0_29 = arith.constant 0 : index
    %c0_30 = arith.constant 0 : index
    %32 = vector.load %arg15[%c0_28, %c0_29, %c0_30] : memref<4x8x32xf32, #tpu.memory_space<vmem>>, vector<4x8x32xf32>
    %33 = vector.broadcast %22 : vector<4x8x1xf32> to vector<4x8x32xf32>
    %34 = arith.mulf %33, %32 : vector<4x8x32xf32>
    "tpu.trace_start"() <{level = 10 : i32, message = "hqk,hkd->hqd"}> : () -> ()
    %cst_31 = arith.constant dense<0.000000e+00> : vector<4x8x32xf32>
    %35 = tpu.matmul %25, %14, %cst_31 {dimension_numbers = #tpu.dot_dimension_numbers<[2], [1], [1], [2], [0, 0, 0, 1, 1, 2], [0], [0]>} : vector<4x8x8xf32>, vector<4x8x32xf32>, vector<4x8x32xf32> -> vector<4x8x32xf32>
    "tpu.trace_stop"() : () -> ()
    %36 = arith.addf %34, %35 : vector<4x8x32xf32>
    %c0_32 = arith.constant 0 : index
    %c0_33 = arith.constant 0 : index
    %c0_34 = arith.constant 0 : index
    %37 = vector.load %arg15[%c0_32, %c0_33, %c0_34] : memref<4x8x32xf32, #tpu.memory_space<vmem>>, vector<4x8x32xf32>
    tpu.vector_store %arg15[%c0_32, %c0_33, %c0_34], %36 {strides = array<i32>} : memref<4x8x32xf32, #tpu.memory_space<vmem>>, vector<4x8x32xf32>,
    %c0_35 = arith.constant 0 : index
    %c0_36 = arith.constant 0 : index
    %c0_37 = arith.constant 0 : index
    %38 = vector.load %arg13[%c0_35, %c0_36, %c0_37] : memref<4x8x1xf32, #tpu.memory_space<vmem>>, vector<4x8x1xf32>
    tpu.vector_store %arg13[%c0_35, %c0_36, %c0_37], %20 {strides = array<i32>} : memref<4x8x1xf32, #tpu.memory_space<vmem>>, vector<4x8x1xf32>,
    %c0_i32_38 = arith.constant 0 : i32
    %39 = arith.cmpi eq, %arg2, %c0_i32_38 : i32
    %40 = arith.extui %39 : i1 to i32
    %c0_i32_39 = arith.constant 0 : i32
    %41 = arith.cmpi ne, %40, %c0_i32_39 : i32
    scf.if %41 {
      %c0_40 = arith.constant 0 : index
      %c0_41 = arith.constant 0 : index
      %c0_42 = arith.constant 0 : index
      %42 = vector.load %arg15[%c0_40, %c0_41, %c0_42] : memref<4x8x32xf32, #tpu.memory_space<vmem>>, vector<4x8x32xf32>
      %c0_43 = arith.constant 0 : index
      %c0_44 = arith.constant 0 : index
      %c0_45 = arith.constant 0 : index
      %43 = vector.load %arg14[%c0_43, %c0_44, %c0_45] : memref<4x8x1xf32, #tpu.memory_space<vmem>>, vector<4x8x1xf32>
      %44 = tpu.reciprocal %43 : vector<4x8x1xf32> -> vector<4x8x1xf32>
      %45 = vector.broadcast %44 : vector<4x8x1xf32> to vector<4x8x32xf32>
      %46 = arith.mulf %42, %45 : vector<4x8x32xf32>
      %47 = vector.extract_strided_slice %46 {offsets = [0, 0, 0], sizes = [1, 8, 32], strides = [1, 1, 1]} : vector<4x8x32xf32> to vector<1x8x32xf32>
      %48 = vector.shape_cast %47 : vector<1x8x32xf32> to vector<8x32xf32>
      %c0_46 = arith.constant 0 : index
      %c0_47 = arith.constant 0 : index
      %49 = vector.load %arg16[%c0_46, %c0_47] : memref<8x128xf32, #tpu.memory_space<vmem>>, vector<8x32xf32>
      tpu.vector_store %arg16[%c0_46, %c0_47], %48 {strides = array<i32>} : memref<8x128xf32, #tpu.memory_space<vmem>>, vector<8x32xf32>,
      %50 = vector.extract_strided_slice %46 {offsets = [1, 0, 0], sizes = [1, 8, 32], strides = [1, 1, 1]} : vector<4x8x32xf32> to vector<1x8x32xf32>
      %51 = vector.shape_cast %50 : vector<1x8x32xf32> to vector<8x32xf32>
      %c0_48 = arith.constant 0 : index
      %c32 = arith.constant 32 : index
      %52 = vector.load %arg16[%c0_48, %c32] : memref<8x128xf32, #tpu.memory_space<vmem>>, vector<8x32xf32>
      tpu.vector_store %arg16[%c0_48, %c32], %51 {strides = array<i32>} : memref<8x128xf32, #tpu.memory_space<vmem>>, vector<8x32xf32>,
      %53 = vector.extract_strided_slice %46 {offsets = [2, 0, 0], sizes = [1, 8, 32], strides = [1, 1, 1]} : vector<4x8x32xf32> to vector<1x8x32xf32>
      %54 = vector.shape_cast %53 : vector<1x8x32xf32> to vector<8x32xf32>
      %c0_49 = arith.constant 0 : index
      %c64 = arith.constant 64 : index
      %55 = vector.load %arg16[%c0_49, %c64] : memref<8x128xf32, #tpu.memory_space<vmem>>, vector<8x32xf32>
      tpu.vector_store %arg16[%c0_49, %c64], %54 {strides = array<i32>} : memref<8x128xf32, #tpu.memory_space<vmem>>, vector<8x32xf32>,
      %56 = vector.extract_strided_slice %46 {offsets = [3, 0, 0], sizes = [1, 8, 32], strides = [1, 1, 1]} : vector<4x8x32xf32> to vector<1x8x32xf32>
      %57 = vector.shape_cast %56 : vector<1x8x32xf32> to vector<8x32xf32>
      %c0_50 = arith.constant 0 : index
      %c96 = arith.constant 96 : index
      %58 = vector.load %arg16[%c0_50, %c96] : memref<8x128xf32, #tpu.memory_space<vmem>>, vector<8x32xf32>
      tpu.vector_store %arg16[%c0_50, %c96], %57 {strides = array<i32>} : memref<8x128xf32, #tpu.memory_space<vmem>>, vector<8x32xf32>,
      %c0_51 = arith.constant 0 : index
      %c0_52 = arith.constant 0 : index
      %59 = vector.load %arg16[%c0_51, %c0_52] : memref<8x128xf32, #tpu.memory_space<vmem>>, vector<8x128xf32>
      %c0_53 = arith.constant 0 : index
      %c0_54 = arith.constant 0 : index
      %60 = vector.load %arg9[%c0_53, %c0_54] : memref<128x128xf32, #tpu.memory_space<vmem>>, vector<128x128xf32>
      %cst_55 = arith.constant dense<0.000000e+00> : vector<8x128xf32>
      %61 = tpu.matmul %59, %60, %cst_55 {dimension_numbers = #tpu.dot_dimension_numbers<[1], [0], [0], [1], [0, 0, 1, 1], [], []>} : vector<8x128xf32>, vector<128x128xf32>, vector<8x128xf32> -> vector<8x128xf32>
      %c0_56 = arith.constant 0 : index
      %c0_57 = arith.constant 0 : index
      %62 = vector.load %arg10[%c0_56, %c0_57] : memref<1x128xf32, #tpu.memory_space<vmem>>, vector<1x128xf32>
      %63 = vector.broadcast %62 : vector<1x128xf32> to vector<8x128xf32>
      %64 = arith.addf %61, %63 : vector<8x128xf32>
      %c0_58 = arith.constant 0 : index
      %c0_59 = arith.constant 0 : index
      %c0_60 = arith.constant 0 : index
      %65 = vector.load %arg11[%c0_58, %c0_59, %c0_60] : memref<1x8x128xf32, #tpu.memory_space<vmem>>, vector<1x8x128xf32>
      %66 = vector.shape_cast %65 : vector<1x8x128xf32> to vector<8x128xf32>
      %67 = vector.shape_cast %64 : vector<8x128xf32> to vector<1x8x128xf32>
      tpu.vector_store %arg11[%c0_58, %c0_59, %c0_60], %67 {strides = array<i32>} : memref<1x8x128xf32, #tpu.memory_space<vmem>>, vector<1x8x128xf32>,
    } else {
    }
    return
  }
  func.func @transform_0(%arg0: i32, %arg1: i32, %arg2: i32) -> (i32, i32, i32, i32) {
    %c0_i32 = arith.constant 0 : i32
    %c0_i32_0 = arith.constant 0 : i32
    %c0_i32_1 = arith.constant 0 : i32
    return %arg0, %c0_i32, %arg1, %c0_i32_0 : i32, i32, i32, i32
  }
  func.func @transform_1(%arg0: i32, %arg1: i32, %arg2: i32) -> (i32, i32, i32, i32) {
    %c0_i32 = arith.constant 0 : i32
    %c0_i32_0 = arith.constant 0 : i32
    %c0_i32_1 = arith.constant 0 : i32
    return %arg0, %c0_i32, %arg2, %c0_i32_0 : i32, i32, i32, i32
  }
  func.func @transform_2(%arg0: i32, %arg1: i32, %arg2: i32) -> (i32, i32, i32, i32) {
    %c0_i32 = arith.constant 0 : i32
    %c0_i32_0 = arith.constant 0 : i32
    %c0_i32_1 = arith.constant 0 : i32
    return %arg0, %c0_i32, %arg2, %c0_i32_0 : i32, i32, i32, i32
  }
  func.func @transform_3(%arg0: i32, %arg1: i32, %arg2: i32) -> (i32, i32) {
    %c0_i32 = arith.constant 0 : i32
    %c0_i32_0 = arith.constant 0 : i32
    %c0_i32_1 = arith.constant 0 : i32
    return %c0_i32, %c0_i32_0 : i32, i32
  }
  func.func @transform_4(%arg0: i32, %arg1: i32, %arg2: i32) -> (i32, i32) {
    %c0_i32 = arith.constant 0 : i32
    %c0_i32_0 = arith.constant 0 : i32
    %c0_i32_1 = arith.constant 0 : i32
    return %c0_i32, %c0_i32_0 : i32, i32
  }
  func.func @transform_5(%arg0: i32, %arg1: i32, %arg2: i32) -> (i32, i32) {
    %c0_i32 = arith.constant 0 : i32
    %c0_i32_0 = arith.constant 0 : i32
    %c0_i32_1 = arith.constant 0 : i32
    return %c0_i32, %c0_i32_0 : i32, i32
  }
  func.func @transform_6(%arg0: i32, %arg1: i32, %arg2: i32) -> (i32, i32) {
    %c0_i32 = arith.constant 0 : i32
    %c0_i32_0 = arith.constant 0 : i32
    %c0_i32_1 = arith.constant 0 : i32
    return %c0_i32, %c0_i32_0 : i32, i32
  }
  func.func @transform_7(%arg0: i32, %arg1: i32, %arg2: i32) -> (i32, i32) {
    %c0_i32 = arith.constant 0 : i32
    %c0_i32_0 = arith.constant 0 : i32
    %c0_i32_1 = arith.constant 0 : i32
    return %c0_i32, %c0_i32_0 : i32, i32
  }
  func.func @transform_8(%arg0: i32, %arg1: i32, %arg2: i32) -> (i32, i32, i32) {
    %c0_i32 = arith.constant 0 : i32
    %c0_i32_0 = arith.constant 0 : i32
    return %arg0, %arg1, %c0_i32 : i32, i32, i32
  }
}

</mosaic_0001>

<bundles_post_ra>
// kernel: tpu_custom_call.1
= control target key start
LH: loop header
LB: loop body
LE: loop exit
PB: predicated region body
PF: predicated region fallthrough
CT: control target
= control target key end

     0   :  { %s3213_s0 = inlined_call_operand.hbm [shape: f32[2,4,8,32], index: 0, kind: input, shape index: {}]   ;;  %s3214_s1 = inlined_call_operand.hbm [shape: f32[2,4,8,32], index: 1, kind: input, shape index: {}]   ;;  %s3215_s2 = inlined_call_operand.hbm [shape: f32[2,4,8,32], index: 2, kind: input, shape index: {}]   ;;  %s3216_s3 = inlined_call_operand.hbm [shape: f32[32,32], index: 3, kind: input, shape index: {}]   ;;  %s3217_s4 = inlined_call_operand.hbm [shape: f32[32,32], index: 4, kind: input, shape index: {}]   ;;  %s3218_s5 = inlined_call_operand.hbm [shape: f32[32,32], index: 5, kind: input, shape index: {}]   ;;  %s3219_s6 = inlined_call_operand.hbm [shape: f32[128,128], index: 6, kind: input, shape index: {}]   ;;  %s3220_s7 = inlined_call_operand.vmem [shape: f32[1,128], index: 7, kind: input, shape index: {}]   ;;  %s3221_s8 = inlined_call_operand.hbm [shape: f32[2,8,128], index: 8, kind: output, shape index: {}]  }
   0x1   :  { %3248 = sst [smem:[#allocation33_spill]] %s3214_s1 }
   0x2   :  { %3249 = sst [smem:[#allocation34_spill]] %s3216_s3 }
   0x3   :  { %3250 = sst [smem:[#allocation35_spill]] %s3218_s5 }
   0x4   :  { %3251 = sst [smem:[#allocation36_spill]] %s3220_s7 }
   0x5   :  { %3252 = sst [smem:[#allocation37_spill]] %s3221_s8 }
   0x6   :  { %13 = vsyncpa [#allocation8], 0 }
   0x7   :  { %15 = vsyncpa [#allocation8 + $0x1], 0 }
   0x8   :  { %16 = vsyncpa [#allocation11], 0 }
   0x9   :  { %18 = vsyncpa [#allocation11 + $0x1], 0 }
   0xa   :  { %19 = vsyncpa [#allocation14], 0 }
   0xb   :  { %20 = vsyncpa [#allocation17], 0 }
   0xc   :  { %21 = vsyncpa [#allocation9], 0 }
   0xd   :  { %23 = vsyncpa [#allocation9 + $0x1], 0  ;;  %s2688_s27 = smov 0   ;;  %s2690_s28 = smov 0  }
   0xe   :  { %s2692_s29 = smov 0   ;;  %s2694_s30 = smov 0  }
   0xf   :  { %s2696_s9 = smov 0   ;;  %s2698_s10 = smov 0  }
  0x10 LB: > { %3253 = sst [smem:[#allocation25_spill]] %s2603_s27  ;;  %s2719_s11 = sadd.s32 4294967295, %s2623_s10   ;;  %s2623_s10 = sphi %s2698_s10, %s29_s10   ;;  %s2619_s9 = sphi %s2696_s9, %s3299_s9   ;;  %s2615_s30 = sphi %s2694_s30, %s3298_s30   ;;  %s2611_s29 = sphi %s2692_s29, %s3302_s29   ;;  %s2607_s28 = sphi %s2690_s28, %s3301_s28   ;;  %s2603_s27 = sphi %s2688_s27, %s3300_s27  }
  0x11   : > { %3254 = sst [smem:[#allocation26_spill]] %s2615_s30  ;;  %s1899_s12 = sadd.s32 4294967294, %s2623_s10  }
  0x12   : > { %3255 = sst [smem:[#allocation27_spill]] %s2619_s9  ;;  %p70_p0 = scmp.ne.s32.totalorder %s2607_s28, %s2603_s27 }
  0x13   : > { %3256 = sst [smem:[#allocation28_spill]] %s2623_s10  ;;  %p3222_p1 = scmp.eq.s32.totalorder %s2719_s11, 0 }
  0x14   : > { %p263_p3 = scmp.eq.s32.totalorder %s1899_s12, 1  ;;  %p1900_p5 = scmp.ge.s32.totalorder %s2623_s10, 1 }
  0x15   : > { %p2728_p4 = por %p3222_p1, %p70_p0  ;;  %p270_p7 = scmp.lt.s32.totalorder %s2623_s10, 3 }
  0x16   : > { %p2733_p6 = por %p263_p3, %p70_p0  ;;  %s2625_s16 = smov [#allocation13]  }
  0x17   : > { %s3257_s13 = scalar_select %p2728_p4, 1, 0 }
  0x18   : > { %s3258_s14 = scalar_select %p2733_p6, 1, 0 }
  0x19   : > { %p2738_p8 = pnand %p1900_p5, %p270_p7  ;;  %s282_s17 = sshll.u32 %s2625_s16, 4  ;;  %s2742_s17 = int_to_ptr.vmem [resolvable:$true] %s282_s17 }
  0x1a   : > { %3259 = sst [smem:[#allocation29_spill]] %s3258_s14  ;;  %s2626_s19 = smov [#allocation16]  }
  0x1b   : > { %s3260_s15 = scalar_select %p2738_p8, 1, 0 }
  0x1c   : > { %p2202_p9 = pneg %p2738_p8  ;;  %s308_s20 = sshll.u32 %s2626_s19, 4  ;;  %s2753_s20 = int_to_ptr.vmem [resolvable:$true] %s308_s20 }
  0x1d   : > { %s3262_s3 = sld [smem:[#allocation34_spill]] }
  0x1e   : > { %p2749_p11 = pnand %p2202_p9, %p3222_p1 }
  0x20   : > { %s3261_s18 = scalar_select %p2749_p11, 1, 0 }
  0x21   : > { %p2763_p13 = pneg %p2749_p11 }
  0x23   : > { %s2327_s23 = scalar_lea.hbm %s3262_s3, 512 }
  0x24   : > { %p2328_p12 = scmp.ne.s32.totalorder %s3262_s3, %s2327_s23  ;;  %p2334_p5 = scmp.lt.u32.totalorder %s2327_s23, %s3262_s3 }
  0x25   : > { %s3263_s26 = scalar_select %p2763_p13, 1, 0 }
  0x26   : > { %p2330_p0 = pnand %p2763_p13, %p2328_p12 }
  0x28   : > { %p2331_p3 = pneg %p2330_p0 }
  0x2a   : > { %p2336_p7 = pnand %p2334_p5, %p2331_p3 }
  0x2c   : > { %2339 = shalt.err (!%p2336_p7)
}
  0x2d   : > { %s2340_s19 = scalar_lea.vmem %s2742_s17, 512  ;;  %p2348_p2 = scmp.lt.s32.totalorder %s2742_s17, %s2742_s17 }
  0x2e   : > { %p2341_p9 = scmp.ne.s32.totalorder %s2742_s17, %s2340_s19  ;;  %p2349_p6 = scmp.lt.s32.totalorder %s2340_s19, %s2340_s19 }
  0x30   : > { %p2343_p10 = pnand %p2341_p9, %p2763_p13  ;;  %p2350_p12 = por %p2349_p6, %p2348_p2 }
  0x32   : > { %p2344_p1 = pneg %p2343_p10 }
  0x34   : > { %p2351_p0 = pnand %p2350_p12, %p2344_p1 }
  0x36   : > { %2354 = shalt.err (!%p2351_p0)
}
  0x37   : > { %s3226_s21 = smov 128   ;;  %s3228_s22 = smov 8  }
  0x38   : > { %2205 = dma.hbm_to_vmem [thread:$0]  (!%p2749_p11), %s3262_s3, 512, %s2742_s17, [#allocation14], %s3226_s21, %s3226_s21, %s3228_s22  }
  0x39   : > { %s3264_s5 = sld [smem:[#allocation35_spill]] }
  0x3f   : > { %s2355_s16 = scalar_lea.hbm %s3264_s5, 512 }
  0x40   : > { %p2356_p1 = scmp.ne.s32.totalorder %s3264_s5, %s2355_s16  ;;  %p2362_p10 = scmp.lt.u32.totalorder %s2355_s16, %s3264_s5 }
  0x42   : > { %p2358_p2 = pnand %p2356_p1, %p2763_p13 }
  0x44   : > { %p2359_p6 = pneg %p2358_p2 }
  0x46   : > { %p2364_p3 = pnand %p2362_p10, %p2359_p6 }
  0x48   : > { %2367 = shalt.err (!%p2364_p3)
}
  0x49   : > { %s2368_s17 = scalar_lea.vmem %s2753_s20, 512  ;;  %p2376_p12 = scmp.lt.s32.totalorder %s2753_s20, %s2753_s20 }
  0x4a   : > { %p2369_p5 = scmp.ne.s32.totalorder %s2753_s20, %s2368_s17  ;;  %p2377_p0 = scmp.lt.s32.totalorder %s2368_s17, %s2368_s17 }
  0x4c   : > { %p2371_p7 = pnand %p2369_p5, %p2763_p13  ;;  %p2378_p1 = por %p2377_p0, %p2376_p12 }
  0x4e   : > { %p2372_p9 = pneg %p2371_p7 }
  0x50   : > { %p2379_p2 = pnand %p2378_p1, %p2372_p9 }
  0x52   : > { %2382 = shalt.err (!%p2379_p2)
}
  0x53   : > { %2211 = dma.hbm_to_vmem [thread:$0]  (!%p2749_p11), %s3264_s5, 512, %s2753_s20, [#allocation17], %s3226_s21, %s3226_s21, %s3228_s22  }
  0x54   : > { %s48_s14 = sadd.s32 1, %s2619_s9  ;;  %s57_s23 = sadd.s32 1, %s2611_s29 }
  0x55   : > { %p50_p6 = scmp.ge.s32.totalorder %s48_s14, 2  ;;  %p64_p10 = scmp.ne.s32.totalorder %s2611_s29, %s2607_s28 }
  0x56   : > { %p65_p3 = scmp.eq.s32.totalorder %s2623_s10, 0  ;;  %p2233_p5 = scmp.lt.s32.totalorder %s2623_s10, 2 }
  0x57   : > { %s3304_s14 = smov (%p50_p6, %s48_s14), 0  ;;  %p3266_p9 = scmp.eq.s32.totalorder %s2719_s11, 1 }
  0x58   : > { %3265 = sst [smem:[#allocation30_spill]] %s3304_s14  ;;  %p66_p7 = por %p65_p3, %p64_p10 }
  0x59   : > { %p2823_p12 = por %p3266_p9, %p64_p10  ;;  %s52_s25 = ssub.s32 %s2619_s9, %s3304_s14 }
  0x5a   : > { %s3230_s12 = sand.u32 1, %s2611_s29   ;;  %p55_p0 = scmp.eq.s32.totalorder %s52_s25, 0 }
  0x5b   : > { %s3267_s24 = scalar_select %p2823_p12, 1, 0 }
  0x5c   : > { %s2832_s20 = sshll.u32 %s3230_s12, 5  ;;  %s2835_s16 = sshll.u32 %s2619_s9, 9 }
  0x5d   : > { %3268 = sst [smem:[#allocation31_spill]] %s3267_s24  ;;  %p2837_p1 = pnand %p2233_p5, %p66_p7 }
  0x5e   : > { %s2842_s17 = scalar_select %p55_p0, %s2611_s29, %s57_s23  }
  0x5f   : > { %s3269_s19 = scalar_select %p2837_p1, 1, 0 }
  0x60   : > { %3270 = sst [smem:[#allocation32_spill]] %s2842_s17  ;;  %s360_s8 = sand.u32 1, %s2623_s10  }
  0x61   : > { %s3271_s1 = sld [smem:[#allocation33_spill]]  ;;  %s364_s25 = scalar_lea.vmem [#allocation10], %s2832_s20 }
  0x62   : > { %s372_s12 = sshll.u32 %s364_s25, 4  ;;  %s2854_s3 = scalar_lea.sflag [#allocation11], %s360_s8  ;;  %s2852_s12 = int_to_ptr.vmem [resolvable:$true] %s372_s12 }
  0x63   : > { %p2860_p6 = pneg %p2837_p1 }
  0x65   : > { %s3272_s23 = scalar_select %p2860_p6, 1, 0 }
  0x67   : > { %s2849_s22 = scalar_lea.hbm %s3271_s1, %s2835_s16  ;;  %s2388_s14 = scalar_lea.hbm %s3271_s1, 1024 }
  0x68   : > { %s2383_s5 = scalar_lea.hbm %s2849_s22, 512  ;;  %p2389_p5 = scmp.lt.u32.totalorder %s2849_s22, %s3271_s1 }
  0x69   : > { %p2384_p2 = scmp.ne.s32.totalorder %s2849_s22, %s2383_s5  ;;  %p2390_p7 = scmp.lt.u32.totalorder %s2388_s14, %s2383_s5 }
  0x6a   : > { %p2392_p0 = scmp.lt.u32.totalorder %s2383_s5, %s2849_s22 }
  0x6b   : > { %p2386_p10 = pnand %p2860_p6, %p2384_p2  ;;  %p2391_p9 = por %p2390_p7, %p2389_p5 }
  0x6d   : > { %p2387_p3 = pneg %p2386_p10  ;;  %p2393_p12 = por %p2392_p0, %p2391_p9 }
  0x6f   : > { %p2394_p4 = pnand %p2393_p12, %p2387_p3 }
  0x71   : > { %2397 = shalt.err (!%p2394_p4)
}
  0x72   : > { %s2398_s8 = scalar_lea.vmem %s2852_s12, 512  ;;  %s2629_s21 = smov [#allocation10]  }
  0x73   : > { %p2399_p2 = scmp.ne.s32.totalorder %s2852_s12, %s2398_s8  ;;  %s2403_s27 = sshll.u32 %s2629_s21, 4  ;;  %s2404_s27 = int_to_ptr.vmem [resolvable:$false] %s2403_s27 }
  0x74   : > { %s2405_s9 = scalar_lea.vmem %s2404_s27, 1024  ;;  %p2406_p11 = scmp.lt.s32.totalorder %s2852_s12, %s2404_s27 }
  0x75   : > { %p2401_p10 = pnand %p2399_p2, %p2860_p6  ;;  %p2407_p13 = scmp.lt.s32.totalorder %s2405_s9, %s2398_s8 }
  0x77   : > { %p2402_p8 = pneg %p2401_p10  ;;  %p2408_p5 = por %p2407_p13, %p2406_p11 }
  0x79   : > { %p2409_p7 = pnand %p2408_p5, %p2402_p8 }
  0x7b   : > { %2412 = shalt.err (!%p2409_p7)
}
  0x7c   : > { %s3273_s5 = smov 8   ;;  %s3274_s14 = smov 128  }
  0x7d   : > { %2221 = dma.hbm_to_vmem [thread:$0]  (!%p2837_p1), %s2849_s22, 512, %s2852_s12, %s2854_s3, %s3274_s14, %s3274_s14, %s3273_s5  }
  0x7e   : > { %s2630_s25 = smov [#allocation15]   ;;  %s2631_s21 = smov [#allocation18]  }
  0x7f   : > { %s295_s1 = sshll.u32 %s2630_s25, 4  ;;  %s321_s17 = sshll.u32 %s2631_s21, 4  ;;  %s296_s1 = int_to_ptr.vmem [resolvable:$true] %s295_s1  ;;  %s322_s17 = int_to_ptr.vmem [resolvable:$true] %s321_s17 }
  0x80   : > { %s2413_s9 = scalar_lea.hbm %s3217_s4, 512  ;;  %p3275_p8 = scmp.ne.s32.totalorder %s3263_s26, 0 }
  0x81   : > { %p2414_p4 = scmp.ne.s32.totalorder %s3217_s4, %s2413_s9  ;;  %p2420_p12 = scmp.lt.u32.totalorder %s2413_s9, %s3217_s4 }
  0x83   : > { %p2416_p11 = pnand %p2414_p4, %p3275_p8 }
  0x85   : > { %p2417_p13 = pneg %p2416_p11 }
  0x87   : > { %p2422_p3 = pnand %p2420_p12, %p2417_p13 }
  0x89   : > { %2425 = shalt.err (!%p2422_p3)
}
  0x8a   : > { %s2426_s22 = scalar_lea.vmem %s296_s1, 512  ;;  %p2434_p10 = scmp.lt.s32.totalorder %s296_s1, %s296_s1 }
  0x8b   : > { %p2427_p9 = scmp.ne.s32.totalorder %s296_s1, %s2426_s22  ;;  %p2435_p5 = scmp.lt.s32.totalorder %s2426_s22, %s2426_s22 }
  0x8d   : > { %p2429_p0 = pnand %p2427_p9, %p3275_p8  ;;  %p2436_p7 = por %p2435_p5, %p2434_p10 }
  0x8f   : > { %p2430_p2 = pneg %p2429_p0 }
  0x91   : > { %p2437_p1 = pnand %p2436_p7, %p2430_p2 }
  0x93   : > { %2440 = shalt.err (!%p2437_p1)
}
  0x94   : > { %p3276_p4 = scmp.ne.s32.totalorder %s3261_s18, 0  ;;  %s2441_s12 = scalar_lea.hbm %s3219_s6, 2048 }
  0x95   : > { %p2442_p11 = scmp.ne.s32.totalorder %s3219_s6, %s2441_s12  ;;  %p2448_p12 = scmp.lt.u32.totalorder %s2441_s12, %s3219_s6 }
  0x96   : > { %2208 = dma.hbm_to_vmem [thread:$0]  (!%p3276_p4), %s3217_s4, 512, %s296_s1, [#allocation14], %s3274_s14, %s3274_s14, %s3273_s5  }
  0x97   : > { %p2444_p1 = pnand %p2442_p11, %p3275_p8 }
  0x99   : > { %p2445_p13 = pneg %p2444_p1 }
  0x9b   : > { %p2450_p3 = pnand %p2448_p12, %p2445_p13 }
  0x9d   : > { %2453 = shalt.err (!%p2450_p3)
}
  0x9e   : > { %s2454_s9 = scalar_lea.vmem %s322_s17, 2048  ;;  %p2462_p10 = scmp.lt.s32.totalorder %s322_s17, %s322_s17 }
  0x9f   : > { %p2455_p9 = scmp.ne.s32.totalorder %s322_s17, %s2454_s9  ;;  %p2463_p5 = scmp.lt.s32.totalorder %s2454_s9, %s2454_s9 }
  0xa1   : > { %p2457_p0 = pnand %p2455_p9, %p3275_p8  ;;  %p2464_p7 = por %p2463_p5, %p2462_p10 }
  0xa3   : > { %p2458_p2 = pneg %p2457_p0 }
  0xa5   : > { %p2465_p6 = pnand %p2464_p7, %p2458_p2 }
  0xa7   : > { %2468 = shalt.err (!%p2465_p6)
}
  0xa8   : > { %2214 = dma.hbm_to_vmem [thread:$0]  (!%p3276_p4), %s3219_s6, 2048, %s322_s17, [#allocation17], %s3274_s14, %s3274_s14, %s3273_s5  }
  0xa9   : > { %s2933_s30 = scalar_lea.hbm %s3213_s0, %s2835_s16  ;;  %s342_s18 = scalar_lea.vmem [#allocation7], %s2832_s20 }
  0xaa   : > { %s350_s10 = sshll.u32 %s342_s18, 4  ;;  %s2942_s25 = scalar_lea.hbm %s3215_s2, %s2835_s16  ;;  %s2936_s10 = int_to_ptr.vmem [resolvable:$true] %s350_s10 }
  0xab   : > { %s3277_s21 = sand.u32 1, %s2611_s29   ;;  %s2469_s27 = scalar_lea.hbm %s2933_s30, 512 }
  0xac   : > { %s2946_s17 = scalar_lea.sflag [#allocation8], %s3277_s21  ;;  %p2470_p6 = scmp.ne.s32.totalorder %s2933_s30, %s2469_s27 }
  0xad   : > { %p3278_p8 = scmp.ne.s32.totalorder %s3272_s23, 0  ;;  %s2474_s1 = scalar_lea.hbm %s3213_s0, 1024 }
  0xae   : > { %p2475_p1 = scmp.lt.u32.totalorder %s2933_s30, %s3213_s0  ;;  %p2476_p13 = scmp.lt.u32.totalorder %s2474_s1, %s2469_s27 }
  0xaf   : > { %p2472_p4 = pnand %p2470_p6, %p3278_p8  ;;  %p2478_p3 = scmp.lt.u32.totalorder %s2469_s27, %s2933_s30 }
  0xb0   : > { %p2477_p12 = por %p2476_p13, %p2475_p1 }
  0xb1   : > { %p2473_p11 = pneg %p2472_p4 }
  0xb2   : > { %p2479_p9 = por %p2478_p3, %p2477_p12 }
  0xb4   : > { %p2480_p0 = pnand %p2479_p9, %p2473_p11 }
  0xb6   : > { %2483 = shalt.err (!%p2480_p0)
}
  0xb7   : > { %s2484_s16 = scalar_lea.vmem %s2936_s10, 512  ;;  %s2632_s7 = smov [#allocation7]  }
  0xb8   : > { %p2485_p2 = scmp.ne.s32.totalorder %s2936_s10, %s2484_s16  ;;  %s2489_s18 = sshll.u32 %s2632_s7, 4  ;;  %s2490_s18 = int_to_ptr.vmem [resolvable:$false] %s2489_s18 }
  0xb9   : > { %s2491_s24 = scalar_lea.vmem %s2490_s18, 1024  ;;  %p2492_p7 = scmp.lt.s32.totalorder %s2936_s10, %s2490_s18 }
  0xba   : > { %p2487_p10 = pnand %p2485_p2, %p3278_p8  ;;  %p2493_p6 = scmp.lt.s32.totalorder %s2491_s24, %s2484_s16 }
  0xbc   : > { %p2488_p5 = pneg %p2487_p10  ;;  %p2494_p4 = por %p2493_p6, %p2492_p7 }
  0xbe   : > { %p2495_p1 = pnand %p2494_p4, %p2488_p5 }
  0xc0   : > { %2498 = shalt.err (!%p2495_p1)
}
  0xc1   : > { %p3279_p11 = scmp.ne.s32.totalorder %s3269_s19, 0  ;;  %s386_s12 = scalar_lea.vmem [#allocation12], %s2832_s20 }
  0xc2   : > { %s394_s21 = sshll.u32 %s386_s12, 4  ;;  %s2499_s27 = scalar_lea.hbm %s2942_s25, 512  ;;  %s2974_s21 = int_to_ptr.vmem [resolvable:$true] %s394_s21 }
  0xc3   : > { %2218 = dma.hbm_to_vmem [thread:$0]  (!%p3279_p11), %s2933_s30, 512, %s2936_s10, %s2946_s17, %s3274_s14, %s3274_s14, %s3273_s5  }
  0xc4   : > { %p2500_p13 = scmp.ne.s32.totalorder %s2942_s25, %s2499_s27  ;;  %s2504_s1 = scalar_lea.hbm %s3215_s2, 1024 }
  0xc5   : > { %p2505_p9 = scmp.lt.u32.totalorder %s2942_s25, %s3215_s2  ;;  %p2506_p0 = scmp.lt.u32.totalorder %s2504_s1, %s2499_s27 }
  0xc6   : > { %p2502_p12 = pnand %p2500_p13, %p3278_p8  ;;  %p2508_p10 = scmp.lt.u32.totalorder %s2499_s27, %s2942_s25 }
  0xc7   : > { %p2507_p2 = por %p2506_p0, %p2505_p9 }
  0xc8   : > { %p2503_p3 = pneg %p2502_p12 }
  0xc9   : > { %p2509_p5 = por %p2508_p10, %p2507_p2 }
  0xcb   : > { %p2510_p7 = pnand %p2509_p5, %p2503_p3 }
  0xcd   : > { %2513 = shalt.err (!%p2510_p7)
}
  0xce   : > { %s2514_s20 = scalar_lea.vmem %s2974_s21, 512  ;;  %s2633_s30 = smov [#allocation12]  }
  0xcf   : > { %p2515_p6 = scmp.ne.s32.totalorder %s2974_s21, %s2514_s20  ;;  %s2519_s10 = sshll.u32 %s2633_s30, 4  ;;  %s2520_s10 = int_to_ptr.vmem [resolvable:$false] %s2519_s10 }
  0xd0   : > { %s2521_s17 = scalar_lea.vmem %s2520_s10, 1024  ;;  %p2522_p13 = scmp.lt.s32.totalorder %s2974_s21, %s2520_s10 }
  0xd1   : > { %p2517_p4 = pnand %p2515_p6, %p3278_p8  ;;  %p2523_p12 = scmp.lt.s32.totalorder %s2521_s17, %s2514_s20 }
  0xd3   : > { %p2518_p1 = pneg %p2517_p4  ;;  %p2524_p9 = por %p2523_p12, %p2522_p13 }
  0xd5   : > { %p2525_p0 = pnand %p2524_p9, %p2518_p1 }
  0xd7   : > { %2528 = shalt.err (!%p2525_p0)
}
  0xd8   : > { %2224 = dma.hbm_to_vmem [thread:$0]  (!%p3279_p11), %s2942_s25, 512, %s2974_s21, %s2854_s3, %s3274_s14, %s3274_s14, %s3273_s5  }
  0xd9   : > { %p3280_p8 = scmp.ne.s32.totalorder %s3260_s15, 0 }
  0xda   : > { %s3004_s23 = sand.u32 (!%p3280_p8), 1, %s2607_s28   ;;  %p3281_p3 = scmp.ne.s32.totalorder (!%p3280_p8), %s3257_s13, 0 }
  0xdb   : > { %406 = sbr.rel (%p3280_p8) target bundleno = 1629 (0x65d), region = 52  ;;  %s1916_s16 = sshll.u32 (!%p3280_p8), %s3004_s23, 5 }
  0xdc   : > { %s409_s7 = scalar_lea.sflag (!%p3280_p8), [#allocation8], %s3004_s23  ;;  %s3008_s18 = scalar_lea.vmem (!%p3280_p8), [#allocation7], %s1916_s16 }
  0xe2   : > { %2582 = dma.done.wait (%p3281_p3), %s409_s7, 512  }
  0xe3   : > { %2584 = vsyncadd (%p3281_p3), %s409_s7, 4294966784  ;;  %s417_s3 = sand.u32 1, %s2719_s11   ;;  %s3015_s19 = scalar_lea.vmem [#allocation10], %s1916_s16 }
  0xe4   : > { %s418_s15 = scalar_lea.sflag [#allocation11], %s417_s3 }
  0xe5   : > { %2586 = dma.done.wait (%p3281_p3), %s418_s15, 1024  }
  0xe6   : > { %2588 = vsyncadd (%p3281_p3), %s418_s15, 4294966272  ;;  %s3021_s5 = scalar_lea.vmem [#allocation12], %s1916_s16  ;;  %p3282_p11 = scmp.eq.s32.totalorder %s2719_s11, 0 }
  0xe8   : > { %2590 = dma.done.wait (%p3282_p11), [#allocation14], 1024   ;;  %p3283_p2 = pmov %p3282_p11 }
  0xea   : > { %2592 = vsyncadd (%p3283_p2), [#allocation14], 4294966272  ;;  %p3284_p10 = pmov %p3283_p2 }
  0xeb   : > { %p3285_p5 = pmov %p3283_p2 }
  0xec   : > { %2594 = dma.done.wait (%p3284_p10), [#allocation17], 2560  }
  0xed   : > { %2596 = vsyncadd (%p3285_p5), [#allocation17], 4294964736  ;;  %vm501_vm0 = vcmask 261120   ;;  %v497_v0 = vld [vmem:[#allocation13] sm:$0xff]  ;;  %v498_v1 = vld [vmem:[#allocation13 + $0x8] sm:$0xff]  ;;  %v2634_v30 = vmov 0.0  }
  0xee   : > { %v499_v2 = vld [vmem:[#allocation13 + $0x10] sm:$0xff]  ;;  %v2130_v3 = vpack.c.bf16 %v498_v1, %v497_v0  ;;  %v500_v4 = vld [vmem:[#allocation13 + $0x18] sm:$0xff]  ;;  %v493_v5 = vld [vmem:[%s3008_s18] sm:$0xff]  ;;  %612 = vst.msk [vmem:[#allocation5] sm:$0xff] %vm501_vm0, %v2634_v30  ;;  %2065 = vmatprep.subr.mxu0 %v2634_v30  ;;  %vm2635_vm1 = vmmov 0   ;;  %vm603_vm2 = vcmask 7168  }
  0xef   : > { %v2134_v6 = vpack.c.bf16 %v500_v4, %v499_v2  ;;  %2021 = vmatprep.mubr.msk.f32.mxu1 %vm501_vm0, %v493_v5  ;;  %v620_v7 = vld [vmem:[#allocation15] sm:$0xff]  ;;  %v621_v8 = vld [vmem:[#allocation15 + $0x8] sm:$0xff]  ;;  %v622_v10 = vld [vmem:[#allocation15 + $0x10] sm:$0xff]  ;;  %613 = vst.msk [vmem:[#allocation5 + $0x8] sm:$0xff] %vm501_vm0, %v2634_v30  ;;  %2067 = vmatprep.mubr.msk.f32.mxu0 %vm2635_vm1, %v2634_v30  ;;  %v2636_v47 = vmov -inf   ;;  %vm1139_vm3 = vcmask 64512  }
  0xf0   : > { %2131 = vmatprep.subr.bf16.mxu1 %v2130_v3  ;;  %v2138_v9 = vpack.c.bf16 %v621_v8, %v620_v7  ;;  %v623_v11 = vld [vmem:[#allocation15 + $0x18] sm:$0xff]  ;;  %v494_v12 = vld [vmem:[%s3008_s18 + $0x8] sm:$0xff]  ;;  %v495_v13 = vld [vmem:[%s3008_s18 + $0x10] sm:$0xff]  ;;  %614 = vst.msk [vmem:[#allocation5 + $0x10] sm:$0xff] %vm501_vm0, %v2634_v30  ;;  %v2637_v60 = vmov 0   ;;  %s2639_s11 = smov 32  }
  0xf1   : > { %2133 = vmatpush3.bf16.msra.mxu1 %v2130_v3  ;;  %v2142_v14 = vpack.c.bf16 %v623_v11, %v622_v10  ;;  %v726_v15 = vld [vmem:[#allocation16] sm:$0xff]  ;;  %v727_v16 = vld [vmem:[#allocation16 + $0x8] sm:$0xff]  ;;  %v496_v17 = vld [vmem:[%s3008_s18 + $0x18] sm:$0xff]  ;;  %615 = vst.msk [vmem:[#allocation5 + $0x18] sm:$0xff] %vm501_vm0, %v2634_v30  ;;  %2301 = vset.pattern.permute.xlu0 %v2637_v60  ;;  %s2640_s13 = smov 64   ;;  %s2641_s14 = smov 96  }
  0xf2   : > { %2135 = vmatprep.subr.bf16.mxu1 %v2134_v6  ;;  %v616_v18 = vld [vmem:[%s3015_s19] sm:$0xff]  ;;  %v2146_v19 = vpack.c.bf16 %v727_v16, %v726_v15  ;;  %v617_v20 = vld [vmem:[%s3015_s19 + $0x8] sm:$0xff]  ;;  %v618_v21 = vld [vmem:[%s3015_s19 + $0x10] sm:$0xff]  ;;  %604 = vst.msk [vmem:[#allocation3] sm:$0xff] %vm603_vm2, %v2636_v47  ;;  %2302 = vset.pattern.permute.xlu1 %v2637_v60  ;;  %s3286_s25 = sld [smem:[#allocation26_spill]]  ;;  %vm1605_vm4 = vcmask 523520  }
  0xf3   : > { %v619_v22 = vld [vmem:[%s3015_s19 + $0x18] sm:$0xff]  ;;  %v728_v23 = vld [vmem:[#allocation16 + $0x10] sm:$0xff]  ;;  %v722_v26 = vld [vmem:[%s3021_s5] sm:$0xff]  ;;  %605 = vst.msk [vmem:[#allocation3 + $0x8] sm:$0xff] %vm603_vm2, %v2636_v47  ;;  %vm1611_vm5 = vcmask 785920   ;;  %vm1617_vm6 = vcmask 1048320  }
  0xf4   : > { %v729_v24 = vld [vmem:[#allocation16 + $0x18] sm:$0xff]  ;;  %v723_v27 = vld [vmem:[%s3021_s5 + $0x8] sm:$0xff]  ;;  %v724_v28 = vld [vmem:[%s3021_s5 + $0x10] sm:$0xff]  ;;  %606 = vst.msk [vmem:[#allocation3 + $0x10] sm:$0xff] %vm603_vm2, %v2636_v47  ;;  %s3287_s24 = sld [smem:[#allocation31_spill]]  ;;  %s1923_s12 = sshll.u32 %s3004_s23, 3 }
  0xf5   : > { %2137 = vmatpush3.bf16.msra.mxu1 %v2134_v6  ;;  %v2150_v25 = vpack.c.bf16 %v729_v24, %v728_v23  ;;  %v725_v29 = vld [vmem:[%s3021_s5 + $0x18] sm:$0xff]  ;;  %607 = vst.msk [vmem:[#allocation3 + $0x18] sm:$0xff] %vm603_vm2, %v2636_v47  ;;  %608 = vst.msk [vmem:[#allocation4] sm:$0xff] %vm603_vm2, %v2634_v30  ;;  %s3288_s8 = sld [smem:[#allocation36_spill]]  ;;  %s488_s1 = scalar_lea.vmem [#allocation19], %s1923_s12 }
  0xf6   : > { %2139 = vmatprep.subr.bf16.mxu1 %v2138_v9  ;;  %609 = vst.msk [vmem:[#allocation4 + $0x8] sm:$0xff] %vm603_vm2, %v2634_v30  ;;  %610 = vst.msk [vmem:[#allocation4 + $0x10] sm:$0xff] %vm603_vm2, %v2634_v30  ;;  %s1729_s22 = sshll.u32 %s488_s1, 4  ;;  %s3289_s30 = sld [smem:[#allocation37_spill]]  ;;  %s3166_s22 = int_to_ptr.vmem [resolvable:$true] %s1729_s22 }
  0xf7   : > { %611 = vst.msk [vmem:[#allocation4 + $0x18] sm:$0xff] %vm603_vm2, %v2634_v30  ;;  %s1715_s16 = scalar_lea.sflag [#allocation9], %s3004_s23  ;;  %s2529_s7 = scalar_lea.vmem %s3166_s22, 128 }
  0xf8   : > { %2022 = vmatmul.mubr.msk.f32.vlgmr.msra.gmra.mrb[0].mxu1 %vm501_vm0, %v494_v12  ;;  %s1950_s9 = sshll.u32 %s3286_s25, 7  ;;  %p2530_p7 = scmp.ne.s32.totalorder %s3166_s22, %s2529_s7 }
  0xf9   : > { %2141 = vmatpush3.bf16.msra.mxu1 %v2138_v9  ;;  %2024 = vmatprep.mubr.msk.f32.mxu1 %vm501_vm0, %v495_v13  ;;  %v3115_v61 = vld [vmem:[#allocation3] sm:$0xff]  ;;  %s2642_s18 = smov [#allocation19]  }
  0xfa   : > { %2143 = vmatprep.subr.bf16.mxu1 %v2142_v14  ;;  %v1136_v0 = vld [vmem:[#allocation3 + $0x8] sm:$0xff]  ;;  %p3291_p6 = scmp.ne.s32.totalorder %s3287_s24, 0  ;;  %s2533_s3 = sshll.u32 %s2642_s18, 4  ;;  %s2534_s3 = int_to_ptr.vmem [resolvable:$false] %s2533_s3 }
  0xfb   : > { %v1137_v1 = vld [vmem:[#allocation3 + $0x10] sm:$0xff]  ;;  %s2535_s15 = scalar_lea.vmem %s2534_s3, 256  ;;  %p2536_p13 = scmp.lt.s32.totalorder %s3166_s22, %s2534_s3 }
  0xfc   : > { %2025 = vmatmul.mubr.msk.f32.gmra.mrb[2].mxu1 %vm501_vm0, %v496_v17  ;;  %v1138_v7 = vld [vmem:[#allocation3 + $0x18] sm:$0xff]  ;;  %s3290_s17 = smov %s3289_s30  ;;  %s3164_s10 = scalar_lea.hbm %s3289_s30, %s1950_s9 }
  0xfd   : > { %2145 = vmatpush3.bf16.msra.mxu1 %v2142_v14  ;;  %2035 = vmatprep.mubr.msk.f32.mxu1 %vm501_vm0, %v616_v18  ;;  %p2531_p4 = pnand %p2530_p7, %p3291_p6  ;;  %p2537_p12 = scmp.lt.s32.totalorder %s2535_s15, %s2529_s7 }
  0xfe   : > { %2147 = vmatprep.subr.bf16.mxu1 %v2146_v19  ;;  %v1203_v47 = vld [vmem:[#allocation4 + $0x18] sm:$0xff] }
  0xff   : > { %p2532_p1 = pneg %p2531_p4  ;;  %p2538_p9 = por %p2537_p12, %p2536_p13 }
 0x100   : > { %2036 = vmatmul.mubr.msk.f32.vlgmr.msra.gmra.mrb[4].mxu1 %vm501_vm0, %v617_v20 }
 0x101   : > { %2038 = vmatprep.mubr.msk.f32.mxu1 %vm501_vm0, %v618_v21  ;;  %2149 = vmatpush3.bf16.msra.mxu1 %v2146_v19  ;;  %p2539_p0 = pnand %p2538_p9, %p2532_p1 }
 0x102   : > { %2151 = vmatprep.subr.bf16.mxu1 %v2150_v25 }
 0x104   : > { %2039 = vmatmul.mubr.msk.f32.gmra.mrb[6].mxu1 %vm501_vm0, %v619_v22 }
 0x105   : > { %2153 = vmatpush3.bf16.msra.mxu1 %v2150_v25  ;;  %2049 = vmatprep.mubr.msk.f32.mxu1 %vm501_vm0, %v722_v26 }
 0x106   : > { %2055 = vmatprep.subr.mxu1 %v2634_v30 }
 0x108   : > { %2050 = vmatmul.mubr.msk.f32.vlgmr.msra.gmra.mrb[8].mxu1 %vm501_vm0, %v723_v27 }
 0x109   : > { %2052 = vmatprep.mubr.msk.f32.mxu1 %vm501_vm0, %v724_v28 }
 0x10c   : > { %2053 = vmatmul.mubr.msk.f32.gmra.mrb[10].mxu1 %vm501_vm0, %v725_v29 }
 0x10d   : > { %2057 = vmatprep.mubr.msk.f32.mxu1 %vm2635_vm1, %v2634_v30 }
 0x1cb   : > { %v2023_v31 = vpop.f32.mrb[0].mxu1 }
 0x1cc   : > { %600 = vst.msk [vmem:[#allocation2 + $0x8] sm:$0xff] %vm501_vm0, %v2023_v31  ;;  %v580_v32 = vpop.f32.mrb[1].mxu1 }
 0x1cd   : > { %599 = vst.msk [vmem:[#allocation2] sm:$0xff] %vm501_vm0, %v580_v32 }
 0x1cf   : > { %v2026_v33 = vpop.f32.mrb[2].mxu1 }
 0x1d0   : > { %602 = vst.msk [vmem:[#allocation2 + $0x18] sm:$0xff] %vm501_vm0, %v2026_v33  ;;  %v590_v34 = vpop.f32.mrb[3].mxu1 }
 0x1d1   : > { %601 = vst.msk [vmem:[#allocation2 + $0x10] sm:$0xff] %vm501_vm0, %v590_v34 }
 0x1d3   : > { %v2037_v35 = vpop.f32.mrb[4].mxu1  ;;  %v828_v40 = vld [vmem:[#allocation2 + $0x8] sm:$0xff] }
 0x1d4   : > { %v703_v36 = vpop.f32.mrb[5].mxu1  ;;  %v827_v38 = vld [vmem:[#allocation2] sm:$0xff] }
 0x1d5   : > { %2056 = vmatpush3.xpose.msk.msra.mxu1 %vm501_vm0, %v703_v36 }
 0x1d6   : > { %2060 = vmatprep.subr.mxu1 %v2634_v30 }
 0x1d7   : > { %v2040_v37 = vpop.f32.mrb[6].mxu1  ;;  %v830_v42 = vld [vmem:[#allocation2 + $0x18] sm:$0xff] }
 0x1d8   : > { %v713_v39 = vpop.f32.mrb[7].mxu1  ;;  %2058 = vmatmul.mubr.msk.f32.vlgmr.msra.gmra.mrb[12].mxu1 %vm501_vm0, %v827_v38  ;;  %v829_v41 = vld [vmem:[#allocation2 + $0x10] sm:$0xff] }
 0x1d9   : > { %2061 = vmatpush3.xpose.msk.msra.mxu1 %vm501_vm0, %v2037_v35  ;;  %2066 = vmatpush3.xpose.msk.msra.mxu0 %vm501_vm0, %v713_v39 }
 0x1da   : > { %2062 = vmatprep.mubr.msk.f32.mxu1 %vm2635_vm1, %v2634_v30  ;;  %2070 = vmatprep.subr.mxu1 %v2634_v30 }
 0x1db   : > { %2075 = vmatprep.subr.mxu0 %v2634_v30  ;;  %v2051_v43 = vpop.f32.mrb[8].mxu1 }
 0x1dc   : > { %2063 = vmatmul.mubr.msk.f32.vlgmr.msra.gmra.mrb[14].mxu1 %vm501_vm0, %v828_v40  ;;  %2068 = vmatmul.mubr.msk.f32.vlgmr.msra.gmra.mrb[0].mxu0 %vm501_vm0, %v829_v41  ;;  %v808_v44 = vpop.f32.mrb[9].mxu1  ;;  %v1201_v40 = vld [vmem:[#allocation4 + $0x8] sm:$0xff] }
 0x1dd   : > { %2071 = vmatpush3.xpose.msk.msra.mxu1 %vm501_vm0, %v2040_v37  ;;  %2072 = vmatprep.mubr.msk.f32.mxu1 %vm2635_vm1, %v2634_v30 }
 0x1de   : > { %2080 = vmatprep.subr.mxu1 %v2634_v30  ;;  %2077 = vmatprep.mubr.msk.f32.mxu0 %vm2635_vm1, %v2634_v30 }
 0x1df   : > { %2076 = vmatpush3.msra.mxu0 %v808_v44  ;;  %v3095_v45 = vpop.f32.mrb[10].mxu1 }
 0x1e0   : > { %2073 = vmatmul.mubr.msk.f32.vlgmr.msra.gmra.mrb[16].mxu1 %vm501_vm0, %v830_v42  ;;  %2085 = vmatprep.subr.mxu0 %v2634_v30  ;;  %v3097_v46 = vpop.f32.mrb[11].mxu1 }
 0x1e1   : > { %2082 = vmatprep.mubr.msk.f32.mxu1 %vm2635_vm1, %v2634_v30  ;;  %2081 = vmatpush3.msra.mxu1 %v2051_v43  ;;  %v1202_v43 = vld [vmem:[#allocation4 + $0x10] sm:$0xff] }
 0x1e2   : > { %2090 = vmatprep.subr.mxu1 %v2634_v30 }
 0x2ab   : > { %v903_v48 = vpop.f32.mrb[12].mxu1 }
 0x2ac   : > { %v2059_v49 = vpop.f32.mrb[13].mxu1  ;;  %v1140_v50 = vsel %vm1139_vm3, %v903_v48, -inf }
 0x2ad   : > { %1141 = vmax.xlane.f32.xlu0 %v1140_v50 }
 0x2af   : > { %v979_v51 = vpop.f32.mrb[14].mxu1  ;;  %v1055_v52 = vpop.f32.mrb[0].mxu0 }
 0x2b0   : > { %v2064_v53 = vpop.f32.mrb[15].mxu1  ;;  %v2069_v54 = vpop.f32.mrb[1].mxu0  ;;  %v1143_v55 = vsel %vm1139_vm3, %v979_v51, -inf  ;;  %v1146_v56 = vsel %vm1139_vm3, %v1055_v52, -inf }
 0x2b1   : > { %1144 = vmax.xlane.f32.xlu0 %v1143_v55  ;;  %1147 = vmax.xlane.f32.xlu1 %v1146_v56 }
 0x2b3   : > { %v1131_v57 = vpop.f32.mrb[16].mxu1 }
 0x2b4   : > { %v2074_v58 = vpop.f32.mrb[17].mxu1  ;;  %v1149_v59 = vsel %vm1139_vm3, %v1131_v57, -inf }
 0x2b5   : > { %1150 = vmax.xlane.f32.xlu1 %v1149_v59 }
 0x33a   : > { %v1142_v62 = vpop.xlane.xlu0 %1141 }
 0x33b   : > { %v3118_v63 = vmax.f32 %v3115_v61, %v1142_v62 }
 0x33d   : > { %v1156_v2 = vsub.f32 %v3115_v61, %v3118_v63  ;;  %1557 = vst.msk [vmem:[#allocation3] sm:$0xff] %vm603_vm2, %v3118_v63  ;;  %1170 = vperm.xlu0 %2301, %v3118_v63  }
 0x33e   : > { %v1145_v3 = vpop.xlane.xlu0 %1144  ;;  %v1148_v4 = vpop.xlane.xlu1 %1147 }
 0x33f   : > { %v1153_v5 = vmax.f32 %v1136_v0, %v1145_v3  ;;  %v1154_v6 = vmax.f32 %v1137_v1, %v1148_v4  ;;  %v1160_v39 = vmul.f32 1.442695, %v1156_v2  ;;  %v1621_v2 = vld [vmem:[#allocation18 + $0x8] sm:$0xff]  ;;  %v1622_v3 = vld [vmem:[#allocation18 + $0x10] sm:$0xff]  ;;  %v2638_v4 = vmov 0.0|0.0  }
 0x341   : > { %v1157_v8 = vsub.f32 %v1136_v0, %v1153_v5  ;;  %1558 = vst.msk [vmem:[#allocation3 + $0x8] sm:$0xff] %vm603_vm2, %v1153_v5  ;;  %v1158_v9 = vsub.f32 %v1137_v1, %v1154_v6  ;;  %1559 = vst.msk [vmem:[#allocation3 + $0x10] sm:$0xff] %vm603_vm2, %v1154_v6  ;;  %1175 = vperm.xlu1 %2302, %v1153_v5   ;;  %v1620_v1 = vld [vmem:[#allocation18] sm:$0xff] }
 0x342   : > { %v1151_v10 = vpop.xlane.xlu1 %1150  ;;  %v2155_v5 = vpack.c.bf16 %v1621_v2, %v1620_v1  ;;  %v1948_v2 = vld [vmem:[%s3288_s8] ss:$0 sm:$0xff] }
 0x343   : > { %v1155_v11 = vmax.f32 %v1138_v7, %v1151_v10  ;;  %v1164_v33 = vmul.f32 1.442695, %v1158_v9  ;;  %v1162_v35 = vmul.f32 1.442695, %v1157_v8  ;;  %v1624_v8 = vld [vmem:[#allocation18 + $0x20] sm:$0xff]  ;;  %v1625_v9 = vld [vmem:[#allocation18 + $0x28] sm:$0xff] }
 0x344   : > { %v2161_v10 = vpack.c.bf16 %v1625_v9, %v1624_v8 }
 0x345   : > { %v1159_v12 = vsub.f32 %v1138_v7, %v1155_v11  ;;  %1560 = vst.msk [vmem:[#allocation3 + $0x18] sm:$0xff] %vm603_vm2, %v1155_v11  ;;  %1180 = vperm.xlu1 %2302, %v1154_v6   ;;  %v1623_v6 = vld [vmem:[#allocation18 + $0x18] sm:$0xff] }
 0x346   : > { %v2158_v7 = vpack.c.bf16 %v1623_v6, %v1622_v3 }
 0x347   : > { %v1166_v36 = vmul.f32 1.442695, %v1159_v12  ;;  %v1627_v12 = vld [vmem:[#allocation18 + $0x38] sm:$0xff] }
 0x349   : > { %1185 = vperm.xlu1 %2302, %v1155_v11   ;;  %v1626_v11 = vld [vmem:[#allocation18 + $0x30] sm:$0xff] }
 0x3bc   : > { %v1171_v13 = vpop.permute.xlu0 %1170 }
 0x3bd   : > { %v1188_v14 = vsub.f32 %v903_v48, %v1171_v13  ;;  %v2164_v13 = vpack.c.bf16 %v1627_v12, %v1626_v11 }
 0x3bf   : > { %v1192_v15 = vmul.f32 1.442695, %v1188_v14  ;;  %v1230_v14 = vld [vmem:[#allocation5 + $0x8] sm:$0xff] }
 0x3c0   : > { %v1176_v16 = vpop.permute.xlu1 %1175 }
 0x3c1   : > { %2303 = vpow2.f32 %v1192_v15  ;;  %v1189_v17 = vsub.f32 %v979_v51, %v1176_v16 }
 0x3c3   : > { %v1194_v18 = vmul.f32 1.442695, %v1189_v17 }
 0x3c4   : > { %v1181_v19 = vpop.permute.xlu1 %1180 }
 0x3c5   : > { %2305 = vpow2.f32 %v1194_v18  ;;  %v1190_v20 = vsub.f32 %v1055_v52, %v1181_v19  ;;  %v1200_v52 = vld [vmem:[#allocation4] sm:$0xff]  ;;  %v1231_v19 = vld [vmem:[#allocation5 + $0x10] sm:$0xff] }
 0x3c7   : > { %v1196_v21 = vmul.f32 1.442695, %v1190_v20 }
 0x3c8   : > { %v1186_v22 = vpop.permute.xlu1 %1185 }
 0x3c9   : > { %2307 = vpow2.f32 %v1196_v21  ;;  %v1191_v23 = vsub.f32 %v1131_v57, %v1186_v22 }
 0x3cb   : > { %v2304_v24 = vpop.eup %2303  ;;  %v1198_v25 = vmul.f32 1.442695, %v1191_v23 }
 0x3cc   : > { %2078 = vmatmul.mubr.msk.f32.vlgmr.msra.gmra.mrb[2].mxu0 %vm1139_vm3, %v2304_v24  ;;  %v1208_v34 = vsel %vm1139_vm3, %v2304_v24, 0.0 }
 0x3cd   : > { %2309 = vpow2.f32 %v1198_v25  ;;  %2086 = vmatpush3.msra.mxu0 %v3097_v46  ;;  %2087 = vmatprep.mubr.msk.f32.mxu0 %vm2635_vm1, %v2634_v30  ;;  %v1232_v25 = vld [vmem:[#allocation5 + $0x18] sm:$0xff] }
 0x3ce   : > { %2311 = vpow2.f32 %v1164_v33  ;;  %2154 = vmatprep.subr.bf16.mxu0 %v2638_v4 }
 0x3cf   : > { %v2306_v26 = vpop.eup %2305  ;;  %2313 = vpow2.f32 %v1162_v35  ;;  %v1628_v35 = vld [vmem:[#allocation18 + $0x40] sm:$0xff] }
 0x3d0   : > { %2083 = vmatmul.mubr.msk.f32.vlgmr.msra.gmra.mrb[18].mxu1 %vm1139_vm3, %v2306_v26  ;;  %v1211_v27 = vsel %vm1139_vm3, %v2306_v26, 0.0  ;;  %2315 = vpow2.f32 %v1166_v36  ;;  %v1629_v36 = vld [vmem:[#allocation18 + $0x48] sm:$0xff] }
 0x3d1   : > { %2091 = vmatpush3.msra.mxu1 %v3095_v45  ;;  %1212 = vadd.xlane.f32.xlu1 %v1211_v27  ;;  %2317 = vpow2.f32 %v1160_v39 }
 0x3d2   : > { %2092 = vmatprep.mubr.msk.f32.mxu1 %vm2635_vm1, %v2634_v30 }
 0x3d3   : > { %v2308_v28 = vpop.eup %2307 }
 0x3d4   : > { %2088 = vmatmul.mubr.msk.f32.vlgmr.msra.gmra.mrb[4].mxu0 %vm1139_vm3, %v2308_v28  ;;  %v1214_v29 = vsel %vm1139_vm3, %v2308_v28, 0.0 }
 0x3d5   : > { %1215 = vadd.xlane.f32.xlu0 %v1214_v29  ;;  %2127 = vmatprep.mubr.msk.f32.mxu0 %vm2635_vm1, %v2634_v30 }
 0x3d6   : > { %2156 = vmatpush3.bf16.msra.mxu0 %v2155_v5 }
 0x3d7   : > { %v2310_v31 = vpop.eup %2309  ;;  %2157 = vmatprep.subr.bf16.mxu0 %v2638_v4 }
 0x3d8   : > { %2093 = vmatmul.mubr.msk.f32.vlgmr.msra.gmra.mrb[20].mxu1 %vm1139_vm3, %v2310_v31  ;;  %v1217_v32 = vsel %vm1139_vm3, %v2310_v31, 0.0  ;;  %v2312_v37 = vpop.eup %2311 }
 0x3d9   : > { %1218 = vadd.xlane.f32.xlu1 %v1217_v32  ;;  %v2314_v38 = vpop.eup %2313  ;;  %v1206_v45 = vmul.f32 %v2312_v37, %v1202_v43  ;;  %v1634_v43 = vld [vmem:[#allocation18 + $0x70] sm:$0xff] }
 0x3da   : > { %v2316_v30 = vpop.eup %2315  ;;  %v1205_v41 = vmul.f32 %v2314_v38, %v1201_v40  ;;  %2159 = vmatpush3.bf16.msra.mxu0 %v2158_v7  ;;  %v1632_v40 = vld [vmem:[#allocation18 + $0x60] sm:$0xff] }
 0x3db   : > { %v1207_v49 = vmul.f32 %v2316_v30, %v1203_v47  ;;  %v2318_v50 = vpop.eup %2317  ;;  %2160 = vmatprep.subr.bf16.mxu0 %v2638_v4 }
 0x3dc   : > { %v1204_v55 = vmul.f32 %v2318_v50, %v1200_v52  ;;  %v1229_v52 = vld [vmem:[#allocation5] sm:$0xff] }
 0x3dd   : > { %1209 = vadd.xlane.f32.xlu1 %v1208_v34 }
 0x3de   : > { %2162 = vmatpush3.bf16.msra.mxu0 %v2161_v10 }
 0x3df   : > { %2163 = vmatprep.subr.bf16.mxu0 %v2638_v4 }
 0x3e2   : > { %2165 = vmatpush3.bf16.msra.mxu0 %v2164_v13 }
 0x3e3   : > { %2166 = vmatprep.subr.bf16.mxu0 %v2638_v4 }
 0x3eb   : > { %1245 = vperm.xlu0 %2301, %v2312_v37   ;;  %v2167_v37 = vpack.c.bf16 %v1629_v36, %v1628_v35 }
 0x3ed   : > { %2168 = vmatpush3.bf16.msra.mxu0 %v2167_v37 }
 0x3ee   : > { %1240 = vperm.xlu1 %2302, %v2314_v38   ;;  %2169 = vmatprep.subr.bf16.mxu0 %v2638_v4  ;;  %v1630_v38 = vld [vmem:[#allocation18 + $0x50] sm:$0xff] }
 0x3f2   : > { %1250 = vperm.xlu1 %2302, %v2316_v30   ;;  %v1631_v30 = vld [vmem:[#allocation18 + $0x58] sm:$0xff] }
 0x3f3   : > { %v2170_v39 = vpack.c.bf16 %v1631_v30, %v1630_v38 }
 0x3f5   : > { %2171 = vmatpush3.bf16.msra.mxu0 %v2170_v39 }
 0x3f6   : > { %2172 = vmatprep.subr.bf16.mxu0 %v2638_v4 }
 0x45e   : > { %v1213_v42 = vpop.xlane.xlu1 %1212 }
 0x45f   : > { %v1221_v44 = vadd.f32 %v1213_v42, %v1205_v41  ;;  %v1633_v41 = vld [vmem:[#allocation18 + $0x68] sm:$0xff] }
 0x460   : > { %v2173_v42 = vpack.c.bf16 %v1633_v41, %v1632_v40 }
 0x461   : > { %1226 = vst.msk [vmem:[#allocation4 + $0x8] sm:$0xff] %vm603_vm2, %v1221_v44  ;;  %v1635_v44 = vld [vmem:[#allocation18 + $0x78] sm:$0xff] }
 0x462   : > { %v1216_v46 = vpop.xlane.xlu0 %1215  ;;  %2174 = vmatpush3.bf16.msra.mxu0 %v2173_v42  ;;  %v2176_v47 = vpack.c.bf16 %v1635_v44, %v1634_v43 }
 0x463   : > { %v1222_v48 = vadd.f32 %v1216_v46, %v1206_v45  ;;  %2175 = vmatprep.subr.bf16.mxu0 %v2638_v4 }
 0x465   : > { %1227 = vst.msk [vmem:[#allocation4 + $0x10] sm:$0xff] %vm603_vm2, %v1222_v48 }
 0x466   : > { %v1219_v51 = vpop.xlane.xlu1 %1218  ;;  %2177 = vmatpush3.bf16.msra.mxu0 %v2176_v47 }
 0x467   : > { %v1223_v53 = vadd.f32 %v1219_v51, %v1207_v49 }
 0x468   : > { %v1569_v54 = vld [vmem:[#allocation4 + $0x8] sm:$0xff] }
 0x469   : > { %1228 = vst.msk [vmem:[#allocation4 + $0x18] sm:$0xff] %vm603_vm2, %v1223_v53  ;;  %2319 = vrcp.f32 %v1569_v54 }
 0x46a   : > { %v1210_v56 = vpop.xlane.xlu1 %1209  ;;  %v1246_v20 = vpop.permute.xlu0 %1245 }
 0x46b   : > { %v1220_v57 = vadd.f32 %v1210_v56, %v1204_v55  ;;  %v1255_v24 = vmul.f32 %v1246_v20, %v1231_v19 }
 0x46c   : > { %v1570_v58 = vld [vmem:[#allocation4 + $0x10] sm:$0xff] }
 0x46d   : > { %1225 = vst.msk [vmem:[#allocation4] sm:$0xff] %vm603_vm2, %v1220_v57  ;;  %2321 = vrcp.f32 %v1570_v58 }
 0x46e   : > { %v1241_v15 = vpop.permute.xlu1 %1240 }
 0x46f   : > { %v1254_v18 = vmul.f32 %v1241_v15, %v1230_v14 }
 0x470   : > { %v1571_v59 = vld [vmem:[#allocation4 + $0x18] sm:$0xff] }
 0x471   : > { %2323 = vrcp.f32 %v1571_v59 }
 0x472   : > { %v1251_v26 = vpop.permute.xlu1 %1250 }
 0x473   : > { %v2320_v60 = vpop.eup %2319  ;;  %v1256_v31 = vmul.f32 %v1251_v26, %v1232_v25 }
 0x474   : > { %1583 = vperm.xlu1 %2302, %v2320_v60   ;;  %v1568_v61 = vld [vmem:[#allocation4] sm:$0xff] }
 0x475   : > { %2325 = vrcp.f32 %v1568_v61 }
 0x477   : > { %v2322_v62 = vpop.eup %2321 }
 0x478   : > { %1588 = vperm.xlu1 %2302, %v2322_v62  }
 0x47b   : > { %v2324_v63 = vpop.eup %2323 }
 0x47c   : > { %1235 = vperm.xlu1 %2302, %v2318_v50   ;;  %1593 = vperm.xlu0 %2301, %v2324_v63  }
 0x47f   : > { %v2326_v0 = vpop.eup %2325 }
 0x480   : > { %1578 = vperm.xlu0 %2301, %v2326_v0  }
 0x49f   : > { %v1326_v16 = vpop.f32.mrb[2].mxu0 }
 0x4a0   : > { %v2079_v17 = vpop.f32.mrb[3].mxu0 }
 0x4a3   : > { %v1399_v21 = vpop.f32.mrb[18].mxu1 }
 0x4a4   : > { %v1550_v22 = vadd.f32 %v1399_v21, %v1254_v18  ;;  %v2084_v23 = vpop.f32.mrb[19].mxu1 }
 0x4a6   : > { %1554 = vst.msk [vmem:[#allocation5 + $0x8] sm:$0xff] %vm501_vm0, %v1550_v22 }
 0x4a7   : > { %v1472_v27 = vpop.f32.mrb[4].mxu0 }
 0x4a8   : > { %v1551_v28 = vadd.f32 %v1472_v27, %v1255_v24  ;;  %v2089_v29 = vpop.f32.mrb[5].mxu0 }
 0x4aa   : > { %1555 = vst.msk [vmem:[#allocation5 + $0x10] sm:$0xff] %vm501_vm0, %v1551_v28 }
 0x4ab   : > { %v1545_v32 = vpop.f32.mrb[20].mxu1 }
 0x4ac   : > { %v1552_v33 = vadd.f32 %v1545_v32, %v1256_v31  ;;  %v2094_v34 = vpop.f32.mrb[21].mxu1 }
 0x4ad   : > { %v1565_v45 = vld [vmem:[#allocation5 + $0x8] sm:$0xff] }
 0x4ae   : > { %1556 = vst.msk [vmem:[#allocation5 + $0x18] sm:$0xff] %vm501_vm0, %v1552_v33 }
 0x4b1   : > { %v1566_v50 = vld [vmem:[#allocation5 + $0x10] sm:$0xff] }
 0x4b5   : > { %v1567_v54 = vld [vmem:[#allocation5 + $0x18] sm:$0xff] }
 0x4f3   : > { %v1584_v46 = vpop.permute.xlu1 %1583 }
 0x4f4   : > { %v1597_v48 = vmul.f32 %v1584_v46, %v1565_v45 }
 0x4f6   : > { %1602 = vrot.lane.b32.xlu1 %v1597_v48, %s2639_s11 }
 0x4f7   : > { %v1589_v49 = vpop.permute.xlu1 %1588 }
 0x4f8   : > { %v1598_v51 = vmul.f32 %v1589_v49, %v1566_v50 }
 0x4fa   : > { %1608 = vrot.lane.b32.xlu0 %v1598_v51, %s2640_s13 }
 0x4fb   : > { %v1594_v53 = vpop.permute.xlu0 %1593  ;;  %v1236_v55 = vpop.permute.xlu1 %1235 }
 0x4fc   : > { %v1599_v56 = vmul.f32 %v1594_v53, %v1567_v54  ;;  %v1253_v57 = vmul.f32 %v1236_v55, %v1229_v52 }
 0x4fe   : > { %v1549_v58 = vadd.f32 %v1326_v16, %v1253_v57  ;;  %1614 = vrot.lane.b32.xlu1 %v1599_v56, %s2641_s14 }
 0x4ff   : > { %v1579_v59 = vpop.permute.xlu0 %1578 }
 0x500   : > { %1553 = vst.msk [vmem:[#allocation5] sm:$0xff] %vm501_vm0, %v1549_v58 }
 0x507   : > { %v1564_v60 = vld [vmem:[#allocation5] sm:$0xff] }
 0x508   : > { %v1596_v61 = vmul.f32 %v1579_v59, %v1564_v60 }
 0x50a   : > { %1600 = vst.msk [vmem:[#allocation6] sm:$0xff] %vm501_vm0, %v1596_v61 }
 0x568   : > { %v1603_v62 = vpop.permute.xlu1 %1602 }
 0x569   : > { %1606 = vst.msk [vmem:[#allocation6] sm:$0xff] %vm1605_vm4, %v1603_v62 }
 0x56c   : > { %v1609_v63 = vpop.permute.xlu0 %1608 }
 0x56d   : > { %1612 = vst.msk [vmem:[#allocation6] sm:$0xff] %vm1611_vm5, %v1609_v63 }
 0x570   : > { %v1615_v0 = vpop.permute.xlu1 %1614 }
 0x571   : > { %1618 = vst.msk [vmem:[#allocation6] sm:$0xff] %vm1617_vm6, %v1615_v0 }
 0x578   : > { %v1619_v1 = vld [vmem:[#allocation6] sm:$0xff] }
 0x579   : > { %2128 = vmatmul.mubr.f32.vlgmr.msra.gmra.mrb[6].mxu0 %v1619_v1 }
 0x64c   : > { %v1709_v3 = vpop.f32.mrb[6].mxu0 }
 0x64d   : > { %v1710_v4 = vadd.f32 %v1948_v2, %v1709_v3  ;;  %v2129_v5 = vpop.f32.mrb[7].mxu0 }
 0x64f   : > { %1713 = vst [vmem:[%s488_s1] sm:$0xff] %v1710_v4 }
 0x650   : > { %2542 = shalt.err (!%p2539_p0)
}
 0x651   : > { %s2543_s23 = scalar_lea.hbm %s3164_s10, 128  ;;  %s2547_s11 = scalar_lea.hbm %s3290_s17, 256 }
 0x652   : > { %p2544_p8 = scmp.ne.s32.totalorder %s3164_s10, %s2543_s23  ;;  %p2548_p2 = scmp.lt.u32.totalorder %s3164_s10, %s3290_s17 }
 0x653   : > { %p2549_p10 = scmp.lt.u32.totalorder %s2547_s11, %s2543_s23  ;;  %p2551_p7 = scmp.lt.u32.totalorder %s2543_s23, %s3164_s10 }
 0x654   : > { %p2545_p3 = pnand %p2544_p8, %p3291_p6 }
 0x655   : > { %p2550_p5 = por %p2549_p10, %p2548_p2 }
 0x656   : > { %p2546_p11 = pneg %p2545_p3 }
 0x657   : > { %p2552_p4 = por %p2551_p7, %p2550_p5 }
 0x659   : > { %p2553_p1 = pnand %p2552_p4, %p2546_p11 }
 0x65b   : > { %2556 = shalt.err (!%p2553_p1)
}
 0x65c   : > { %2200 = dma.vmem_to_hbm [thread:$0]  (%p3291_p6), %s3166_s22, 128, %s3164_s10, %s1715_s16  }
 0x65d PF: > { %s3292_s25 = sld [smem:[#allocation25_spill]]  ;;  %s3293_s12 = sld [smem:[#allocation29_spill]] }
 0x65e   : > { %s3294_s21 = sld [smem:[#allocation28_spill]] }
 0x663   : > { %s1741_s27 = sand.u32 1, %s3292_s25   ;;  %p3295_p13 = scmp.ne.s32.totalorder %s3293_s12, 0 }
 0x664   : > { %p3296_p12 = scmp.ge.s32.totalorder %s3294_s21, 2  ;;  %s1742_s8 = scalar_lea.sflag [#allocation9], %s1741_s27 }
 0x666   : > { %p2226_p9 = pnand %p3296_p12, %p3295_p13 }
 0x668   : > { %2598 = dma.done.wait (!%p2226_p9), %s1742_s8, 128  }
 0x669   : > { %2600 = vsyncadd (!%p2226_p9), %s1742_s8, 4294967168  ;;  %s29_s10 = sadd.s32 1, %s3294_s21   ;;  %s3297_s24 = sld [smem:[#allocation32_spill]] }
 0x66a   : > { %p26_p0 = scmp.ge.s32.totalorder %s29_s10, 4   ;;  %s3298_s30 = sld [smem:[#allocation27_spill]] }
 0x66b   : > { %s3299_s9 = sld [smem:[#allocation30_spill]]  ;;  %s3300_s27 = smov %s2607_s28 }
 0x66c   : > { %s3301_s28 = smov %s2611_s29  ;;  %28 = sbr.rel (!%p26_p0) target bundleno = 16 (0x10), region = 145 }
 0x66f   : > { %s3302_s29 = smov %s3297_s24 }
 0x673   :  { %1747 = vsyncpa [#allocation8], 1 }
 0x674   :  { %1749 = vsyncpa [#allocation8 + $0x1], 1 }
 0x675   :  { %1750 = vsyncpa [#allocation11], 1 }
 0x676   :  { %1752 = vsyncpa [#allocation11 + $0x1], 1 }
 0x677   :  { %1753 = vsyncpa [#allocation14], 1 }
 0x678   :  { %1754 = vsyncpa [#allocation17], 1 }
 0x679   :  { %1755 = vsyncpa [#allocation9], 1 }
 0x67a   :  { %1757 = vsyncpa [#allocation9 + $0x1], 1 }

</bundles_post_ra>
